<compile_context>
chip_gen: v7x
topology: tpu7x:2x2x1
jax: 0.10.0
libtpu: 0.0.40
codegen_flags: <defaults>
</compile_context>

<pallas_src>
import functools

import jax
import jax.numpy as jnp
from jax import lax
from jax.experimental import pallas as pl
from jax.experimental.pallas import tpu as pltpu


# ------------------------------- Pallas kernel ------------------------------ #

def prop_block_kernel(frag_ref, fragT_ref, ctr_ref, kern_ref, wexp_ref,
                      gfwd_ref, gbwd_ref, out_ref,
                      *, radius, sigma, eps, inv_spatial):
    """Fused KernelPropagation + BasicS2Conv + InstanceNorm2d(affine=False) + ReLU, per batch.

    frag_ref:  (M, 3)              fragment points               (shared across batch)
    fragT_ref: (3, M)              fragment points, transposed   (shared)
    ctr_ref:   (1, N, 3)           query centers for this batch element
    kern_ref:  (3, KA)             anchor-rotated kernel points, KA = KS*NA (k-major)
    wexp_ref:  (KA, C_OUT*NA)      anchor-expanded conv weight: [k*NA+a', c*NA+a] = W[c,k]*delta(a,a')
    gfwd_ref:  (C_OUT*NA, C_OUT)   group indicator (lane-group -> channel)
    gbwd_ref:  (C_OUT, C_OUT*NA)   group indicator transpose (channel -> lane-group)
    out_ref:   (1, N, C_OUT*NA)    out: normalized/relu'd features, lane-dense
    """
    frag = frag_ref[...]                      # (M, 3)
    fragT = fragT_ref[...]                    # (3, M)
    ctr = ctr_ref[0]                          # (N, 3)
    kern = kern_ref[...]                      # (3, KA)

    inv2s = 1.0 / (2.0 * sigma)

    # --- squared distance center<->fragment, per coordinate on the VPU (no K=3 matmul) ---
    dx = ctr[:, 0:1] - fragT[0:1, :]          # (N, M)
    dy = ctr[:, 1:2] - fragT[1:2, :]
    dz = ctr[:, 2:3] - fragT[2:3, :]
    d2 = dx * dx + dy * dy + dz * dz          # (N, M)

    mask = (d2 < radius * radius).astype(jnp.float32)          # (N, M)
    cnt = jnp.sum(mask, axis=1, keepdims=True)                  # (N, 1) neighbor counts
    # fold the /(cnt+1) normalization into the fragment weights (cnt output not needed)
    a_t = (mask * jnp.exp(-d2 * inv2s)) / (cnt + 1.0)            # (N, M)

    # --- fragment . kernel-point, per coordinate (VPU), max-shifted exp (exact, overflow-safe) ---
    fk = (frag[:, 0:1] * kern[0:1, :]
          + frag[:, 1:2] * kern[1:2, :]
          + frag[:, 2:3] * kern[2:3, :])                         # (M, KA)
    shift = jnp.max(fk, axis=0, keepdims=True)                   # (1, KA)
    b = jnp.exp((fk - shift) * (1.0 / sigma))                    # (M, KA), <= 1

    # --- center . kernel-point and ||kernel||^2 (VPU) ---
    ck = (ctr[:, 0:1] * kern[0:1, :]
          + ctr[:, 1:2] * kern[1:2, :]
          + ctr[:, 2:3] * kern[2:3, :])                          # (N, KA)
    k2 = jnp.sum(kern * kern, axis=0, keepdims=True)             # (1, KA)
    c_t = jnp.exp(-(2.0 * ck + k2 - 2.0 * shift) * inv2s)        # (N, KA)

    # --- the single real MXU contraction over fragment points: lane-dense (N, KA) output ---
    wts_t = jnp.dot(a_t, b, preferred_element_type=jnp.float32) * c_t        # (N, KA)

    # --- BasicS2Conv via anchor-expanded weight: lane-dense (N, C_OUT*NA) ---
    feat = jnp.dot(wts_t, wexp_ref[...], preferred_element_type=jnp.float32)  # (N, C_OUT*NA)

    # --- InstanceNorm2d(affine=False): per channel over (anchor, point), E[x^2]-mu^2, + ReLU ---
    g_fwd = gfwd_ref[...]                                        # (C_OUT*NA, C_OUT)
    g_bwd = gbwd_ref[...]                                        # (C_OUT, C_OUT*NA)

    r1 = jnp.dot(feat, g_fwd, preferred_element_type=jnp.float32)             # (N, C_OUT)
    r2 = jnp.dot(feat * feat, g_fwd, preferred_element_type=jnp.float32)      # (N, C_OUT)
    mu = jnp.sum(r1, axis=0, keepdims=True) * inv_spatial                     # (1, C_OUT)
    ex2 = jnp.sum(r2, axis=0, keepdims=True) * inv_spatial                    # (1, C_OUT)
    var = jnp.maximum(ex2 - mu * mu, 0.0)                                     # biased var
    inv_std = lax.rsqrt(var + eps)                                            # (1, C_OUT)  (EUP)

    n_rows = feat.shape[0]
    mu_l = jnp.dot(jnp.broadcast_to(mu, (n_rows, mu.shape[1])), g_bwd,
                   preferred_element_type=jnp.float32)                        # (N, C_OUT*NA)
    inv_l = jnp.dot(jnp.broadcast_to(inv_std, (n_rows, inv_std.shape[1])), g_bwd,
                    preferred_element_type=jnp.float32)                       # (N, C_OUT*NA)

    out_ref[0] = jnp.maximum((feat - mu_l) * inv_l, 0.0)         # lane-dense 512-wide store


# ------------------------------- JAX wrapper -------------------------------- #

def propagation_block_forward(frag, clouds, kernels_rot, W, *, radius, sigma, eps=1e-5):
    M = frag.shape[0]
    B, _, N = clouds.shape
    KS, NA, _ = kernels_rot.shape
    KA = KS * NA
    C_OUT = W.shape[0]
    CA = C_OUT * NA

    # --- layout plumbing (tiny, constant inputs) ---
    fragT = frag.T                                               # (3, M)
    centers_t = clouds.transpose(0, 2, 1)                        # (B, N, 3)
    kern_3ka = kernels_rot.reshape(KA, 3).T                      # (3, KA)  k-major flatten

    # anchor-expanded conv weight: wexp[k*NA+a', c*NA+a] = W[c,k] * delta(a, a')
    eye_na = jnp.eye(NA, dtype=jnp.float32)
    wexp = jnp.einsum("ck,ab->kacb", W.astype(jnp.float32), eye_na).reshape(KA, CA)

    # channel-group indicator matrices for the InstanceNorm reductions / broadcast-back
    g_fwd = jnp.repeat(jnp.eye(C_OUT, dtype=jnp.float32), NA, axis=0)     # (CA, C_OUT)
    g_bwd = g_fwd.T                                                        # (C_OUT, CA)

    cost = pl.CostEstimate(
        flops=2 * B * (N * M * KA + N * KA * CA + 4 * N * CA * C_OUT),
        transcendentals=B * (N * M + M * KA + N * KA + C_OUT),
        bytes_accessed=4 * (2 * M * 3 + B * N * 3 + 3 * KA + KA * CA
                            + 2 * CA * C_OUT + B * N * CA),
    )

    feats_t = pl.pallas_call(
        functools.partial(prop_block_kernel, radius=radius, sigma=sigma, eps=eps,
                          inv_spatial=1.0 / (NA * N)),
        grid=(B,),
        in_specs=[
            pl.BlockSpec((M, 3), lambda b: (0, 0)),              # frag
            pl.BlockSpec((3, M), lambda b: (0, 0)),              # frag^T
            pl.BlockSpec((1, N, 3), lambda b: (b, 0, 0)),        # centers (this batch)
            pl.BlockSpec((3, KA), lambda b: (0, 0)),             # rotated kernel points
            pl.BlockSpec((KA, CA), lambda b: (0, 0)),            # anchor-expanded conv weight
            pl.BlockSpec((CA, C_OUT), lambda b: (0, 0)),         # group indicator fwd
            pl.BlockSpec((C_OUT, CA), lambda b: (0, 0)),         # group indicator bwd
        ],
        out_specs=pl.BlockSpec((1, N, CA), lambda b: (b, 0, 0)),
        out_shape=jax.ShapeDtypeStruct((B, N, CA), jnp.float32),
        compiler_params=pltpu.CompilerParams(dimension_semantics=("parallel",)),
        cost_estimate=cost,
    )(frag, fragT, centers_t, kern_3ka, wexp, g_fwd, g_bwd)

    # (B, N, C_OUT*NA) -> (B, C_OUT, NA, N)   (layout plumbing outside the kernel)
    feats = feats_t.reshape(B, N, C_OUT, NA).transpose(0, 2, 3, 1)
    return feats


# --------------------------- parameter synthesis ---------------------------- #

def make_rotations(key, na):
    """Deterministic random rotation matrices (SO(3) anchors)."""
    m = jax.random.normal(key, (na, 3, 3), dtype=jnp.float32)
    q, r = jnp.linalg.qr(m)
    d = jnp.sign(jnp.diagonal(r, axis1=-2, axis2=-1))
    q = q * d[:, None, :]
    det = jnp.linalg.det(q)
    q = q.at[:, :, 0].multiply(jnp.sign(det)[:, None])
    return q.astype(jnp.float32)


def make_kernel_points(key, ks, radius, condense_ratio=0.7):
    """Synthetic spherical kernel points: origin + (ks-1) points on a sphere."""
    pts = jax.random.normal(key, (ks - 1, 3), dtype=jnp.float32)
    pts = pts / jnp.linalg.norm(pts, axis=1, keepdims=True) * (condense_ratio * radius)
    return jnp.concatenate([jnp.zeros((1, 3), jnp.float32), pts], axis=0)


# ---------------------------------- main ------------------------------------ #

if __name__ == "__main__":
    key = jax.random.PRNGKey(0)
    k_frag, k_cloud, k_anchor, k_kern, k_w = jax.random.split(key, 5)

    # params = dict(dim_in=1, dim_out=C_OUT, n_center=N, kernel_size=KS,
    #               radius=RADIUS, sigma=SIGMA, kanchor=NA)
    B, M, N = 2, 64, 16          # batch, fragment points, n_center query points
    KS, NA, C_OUT = 8, 16, 32    # kernel points, anchors, dim_out
    RADIUS, SIGMA = 0.8, 0.32

    frag = jax.random.uniform(k_frag, (M, 3), minval=-0.6, maxval=0.6, dtype=jnp.float32)
    clouds = jax.random.uniform(k_cloud, (B, 3, N), minval=-0.6, maxval=0.6, dtype=jnp.float32)

    anchors = make_rotations(k_anchor, NA)                          # (NA, 3, 3)
    base_kernels = make_kernel_points(k_kern, KS, RADIUS)           # (KS, 3)
    kernels_rot = jnp.einsum("aij,kj->kai", anchors, base_kernels)  # (KS, NA, 3)
    kernels_rot = kernels_rot.astype(jnp.float32)

    # BasicS2Conv weight, xavier-normal-ish deterministic init (gain=0.001 as in vgtk)
    std = 0.001 * (2.0 / (KS + C_OUT)) ** 0.5
    W = std * jax.random.normal(k_w, (C_OUT, KS), dtype=jnp.float32)

    feats = propagation_block_forward(frag, clouds, kernels_rot, W, radius=RADIUS, sigma=SIGMA)
    # SphericalPointCloud(xyz=clouds, feats=feats, anchors=anchors)
    out = {"xyz": clouds, "feats": feats, "anchors": anchors}

    jax.block_until_ready(out["feats"])
    assert out["feats"].shape == (B, C_OUT, NA, N)
    print("KERNEL_OK")
</pallas_src>

<mosaic_0001>
module attributes {stable_mosaic.version = 11 : i64} {
  func.func @prop_block_kernel(%arg0: i32, %arg1: memref<64x3xf32, #tpu.memory_space<vmem>>, %arg2: memref<3x64xf32, #tpu.memory_space<vmem>>, %arg3: memref<1x16x3xf32, #tpu.memory_space<vmem>>, %arg4: memref<3x128xf32, #tpu.memory_space<vmem>>, %arg5: memref<128x512xf32, #tpu.memory_space<vmem>>, %arg6: memref<512x32xf32, #tpu.memory_space<vmem>>, %arg7: memref<32x512xf32, #tpu.memory_space<vmem>>, %arg8: memref<1x16x512xf32, #tpu.memory_space<vmem>>) attributes {dimension_semantics = [#tpu.dimension_semantics<parallel>], iteration_bounds = array<i64: 2>, scalar_prefetch = 0 : i64, scratch_operands = 0 : i64, tpu.core_type = #tpu.core_type<tc>, window_params = [{pipeline_mode = #tpu.pipeline_mode<synchronous>, transform_indices = @transform_0, window_bounds = array<i64: 64, 3>}, {pipeline_mode = #tpu.pipeline_mode<synchronous>, transform_indices = @transform_1, window_bounds = array<i64: 3, 64>}, {transform_indices = @transform_2, window_bounds = array<i64: 1, 16, 3>}, {pipeline_mode = #tpu.pipeline_mode<synchronous>, transform_indices = @transform_3, window_bounds = array<i64: 3, 128>}, {pipeline_mode = #tpu.pipeline_mode<synchronous>, transform_indices = @transform_4, window_bounds = array<i64: 128, 512>}, {pipeline_mode = #tpu.pipeline_mode<synchronous>, transform_indices = @transform_5, window_bounds = array<i64: 512, 32>}, {pipeline_mode = #tpu.pipeline_mode<synchronous>, transform_indices = @transform_6, window_bounds = array<i64: 32, 512>}, {transform_indices = @transform_7, window_bounds = array<i64: 1, 16, 512>}]} {
    %c0 = arith.constant 0 : index
    %c0_0 = arith.constant 0 : index
    %0 = vector.load %arg1[%c0, %c0_0] : memref<64x3xf32, #tpu.memory_space<vmem>>, vector<64x3xf32>
    %c0_1 = arith.constant 0 : index
    %c0_2 = arith.constant 0 : index
    %1 = vector.load %arg2[%c0_1, %c0_2] : memref<3x64xf32, #tpu.memory_space<vmem>>, vector<3x64xf32>
    %c0_3 = arith.constant 0 : index
    %c0_4 = arith.constant 0 : index
    %c0_5 = arith.constant 0 : index
    %2 = vector.load %arg3[%c0_3, %c0_4, %c0_5] : memref<1x16x3xf32, #tpu.memory_space<vmem>>, vector<1x16x3xf32>
    %3 = vector.shape_cast %2 : vector<1x16x3xf32> to vector<16x3xf32>
    %c0_6 = arith.constant 0 : index
    %c0_7 = arith.constant 0 : index
    %4 = vector.load %arg4[%c0_6, %c0_7] : memref<3x128xf32, #tpu.memory_space<vmem>>, vector<3x128xf32>
    %5 = vector.extract_strided_slice %3 {offsets = [0, 0], sizes = [16, 1], strides = [1, 1]} : vector<16x3xf32> to vector<16x1xf32>
    %6 = vector.extract_strided_slice %1 {offsets = [0, 0], sizes = [1, 64], strides = [1, 1]} : vector<3x64xf32> to vector<1x64xf32>
    %7 = vector.broadcast %5 : vector<16x1xf32> to vector<16x64xf32>
    %8 = vector.broadcast %6 : vector<1x64xf32> to vector<16x64xf32>
    %9 = arith.subf %7, %8 : vector<16x64xf32>
    %10 = vector.extract_strided_slice %3 {offsets = [0, 1], sizes = [16, 1], strides = [1, 1]} : vector<16x3xf32> to vector<16x1xf32>
    %11 = vector.extract_strided_slice %1 {offsets = [1, 0], sizes = [1, 64], strides = [1, 1]} : vector<3x64xf32> to vector<1x64xf32>
    %12 = vector.broadcast %10 : vector<16x1xf32> to vector<16x64xf32>
    %13 = vector.broadcast %11 : vector<1x64xf32> to vector<16x64xf32>
    %14 = arith.subf %12, %13 : vector<16x64xf32>
    %15 = vector.extract_strided_slice %3 {offsets = [0, 2], sizes = [16, 1], strides = [1, 1]} : vector<16x3xf32> to vector<16x1xf32>
    %16 = vector.extract_strided_slice %1 {offsets = [2, 0], sizes = [1, 64], strides = [1, 1]} : vector<3x64xf32> to vector<1x64xf32>
    %17 = vector.broadcast %15 : vector<16x1xf32> to vector<16x64xf32>
    %18 = vector.broadcast %16 : vector<1x64xf32> to vector<16x64xf32>
    %19 = arith.subf %17, %18 : vector<16x64xf32>
    %20 = arith.mulf %9, %9 : vector<16x64xf32>
    %21 = arith.mulf %14, %14 : vector<16x64xf32>
    %22 = arith.addf %20, %21 : vector<16x64xf32>
    %23 = arith.mulf %19, %19 : vector<16x64xf32>
    %24 = arith.addf %22, %23 : vector<16x64xf32>
    %cst = arith.constant 6.400000e-01 : f32
    %25 = vector.broadcast %cst : f32 to vector<16x64xf32>
    %26 = arith.cmpf olt, %24, %25 : vector<16x64xf32>
    %27 = arith.extui %26 : vector<16x64xi1> to vector<16x64xi32>
    %28 = arith.sitofp %27 : vector<16x64xi32> to vector<16x64xf32>
    %cst_8 = arith.constant dense<0.000000e+00> : vector<16xf32>
    %29 = vector.multi_reduction <add>, %28, %cst_8 [1] : vector<16x64xf32> to vector<16xf32>
    %30 = vector.shape_cast %29 : vector<16xf32> to vector<16x1xf32>
    %cst_9 = arith.constant 0.000000e+00 : f32
    %31 = vector.broadcast %cst_9 : f32 to vector<16x64xf32>
    %32 = arith.subf %31, %24 : vector<16x64xf32>
    %cst_10 = arith.constant 1.562500e+00 : f32
    %33 = vector.broadcast %cst_10 : f32 to vector<16x64xf32>
    %34 = arith.mulf %32, %33 : vector<16x64xf32>
    %35 = math.exp %34 : vector<16x64xf32>
    %36 = arith.mulf %28, %35 : vector<16x64xf32>
    %cst_11 = arith.constant 1.000000e+00 : f32
    %37 = vector.broadcast %cst_11 : f32 to vector<16x1xf32>
    %38 = arith.addf %30, %37 : vector<16x1xf32>
    %39 = vector.broadcast %38 : vector<16x1xf32> to vector<16x64xf32>
    %40 = arith.divf %36, %39 : vector<16x64xf32>
    %41 = vector.extract_strided_slice %0 {offsets = [0, 0], sizes = [64, 1], strides = [1, 1]} : vector<64x3xf32> to vector<64x1xf32>
    %42 = vector.extract_strided_slice %4 {offsets = [0, 0], sizes = [1, 128], strides = [1, 1]} : vector<3x128xf32> to vector<1x128xf32>
    %43 = vector.broadcast %41 : vector<64x1xf32> to vector<64x128xf32>
    %44 = vector.broadcast %42 : vector<1x128xf32> to vector<64x128xf32>
    %45 = arith.mulf %43, %44 : vector<64x128xf32>
    %46 = vector.extract_strided_slice %0 {offsets = [0, 1], sizes = [64, 1], strides = [1, 1]} : vector<64x3xf32> to vector<64x1xf32>
    %47 = vector.extract_strided_slice %4 {offsets = [1, 0], sizes = [1, 128], strides = [1, 1]} : vector<3x128xf32> to vector<1x128xf32>
    %48 = vector.broadcast %46 : vector<64x1xf32> to vector<64x128xf32>
    %49 = vector.broadcast %47 : vector<1x128xf32> to vector<64x128xf32>
    %50 = arith.mulf %48, %49 : vector<64x128xf32>
    %51 = arith.addf %45, %50 : vector<64x128xf32>
    %52 = vector.extract_strided_slice %0 {offsets = [0, 2], sizes = [64, 1], strides = [1, 1]} : vector<64x3xf32> to vector<64x1xf32>
    %53 = vector.extract_strided_slice %4 {offsets = [2, 0], sizes = [1, 128], strides = [1, 1]} : vector<3x128xf32> to vector<1x128xf32>
    %54 = vector.broadcast %52 : vector<64x1xf32> to vector<64x128xf32>
    %55 = vector.broadcast %53 : vector<1x128xf32> to vector<64x128xf32>
    %56 = arith.mulf %54, %55 : vector<64x128xf32>
    %57 = arith.addf %51, %56 : vector<64x128xf32>
    %cst_12 = arith.constant dense<0xFF800000> : vector<128xf32>
    %58 = vector.multi_reduction <maximumf>, %57, %cst_12 [0] : vector<64x128xf32> to vector<128xf32>
    %59 = vector.shape_cast %58 : vector<128xf32> to vector<1x128xf32>
    %60 = vector.broadcast %59 : vector<1x128xf32> to vector<64x128xf32>
    %61 = arith.subf %57, %60 : vector<64x128xf32>
    %cst_13 = arith.constant 3.125000e+00 : f32
    %62 = vector.broadcast %cst_13 : f32 to vector<64x128xf32>
    %63 = arith.mulf %61, %62 : vector<64x128xf32>
    %64 = math.exp %63 : vector<64x128xf32>
    %65 = vector.extract_strided_slice %3 {offsets = [0, 0], sizes = [16, 1], strides = [1, 1]} : vector<16x3xf32> to vector<16x1xf32>
    %66 = vector.extract_strided_slice %4 {offsets = [0, 0], sizes = [1, 128], strides = [1, 1]} : vector<3x128xf32> to vector<1x128xf32>
    %67 = vector.broadcast %65 : vector<16x1xf32> to vector<16x128xf32>
    %68 = vector.broadcast %66 : vector<1x128xf32> to vector<16x128xf32>
    %69 = arith.mulf %67, %68 : vector<16x128xf32>
    %70 = vector.extract_strided_slice %3 {offsets = [0, 1], sizes = [16, 1], strides = [1, 1]} : vector<16x3xf32> to vector<16x1xf32>
    %71 = vector.extract_strided_slice %4 {offsets = [1, 0], sizes = [1, 128], strides = [1, 1]} : vector<3x128xf32> to vector<1x128xf32>
    %72 = vector.broadcast %70 : vector<16x1xf32> to vector<16x128xf32>
    %73 = vector.broadcast %71 : vector<1x128xf32> to vector<16x128xf32>
    %74 = arith.mulf %72, %73 : vector<16x128xf32>
    %75 = arith.addf %69, %74 : vector<16x128xf32>
    %76 = vector.extract_strided_slice %3 {offsets = [0, 2], sizes = [16, 1], strides = [1, 1]} : vector<16x3xf32> to vector<16x1xf32>
    %77 = vector.extract_strided_slice %4 {offsets = [2, 0], sizes = [1, 128], strides = [1, 1]} : vector<3x128xf32> to vector<1x128xf32>
    %78 = vector.broadcast %76 : vector<16x1xf32> to vector<16x128xf32>
    %79 = vector.broadcast %77 : vector<1x128xf32> to vector<16x128xf32>
    %80 = arith.mulf %78, %79 : vector<16x128xf32>
    %81 = arith.addf %75, %80 : vector<16x128xf32>
    %82 = arith.mulf %4, %4 : vector<3x128xf32>
    %cst_14 = arith.constant dense<0.000000e+00> : vector<128xf32>
    %83 = vector.multi_reduction <add>, %82, %cst_14 [0] : vector<3x128xf32> to vector<128xf32>
    %84 = vector.shape_cast %83 : vector<128xf32> to vector<1x128xf32>
    %cst_15 = arith.constant 2.000000e+00 : f32
    %85 = vector.broadcast %cst_15 : f32 to vector<16x128xf32>
    %86 = arith.mulf %85, %81 : vector<16x128xf32>
    %87 = vector.broadcast %84 : vector<1x128xf32> to vector<16x128xf32>
    %88 = arith.addf %86, %87 : vector<16x128xf32>
    %cst_16 = arith.constant 2.000000e+00 : f32
    %89 = vector.broadcast %cst_16 : f32 to vector<1x128xf32>
    %90 = arith.mulf %89, %59 : vector<1x128xf32>
    %91 = vector.broadcast %90 : vector<1x128xf32> to vector<16x128xf32>
    %92 = arith.subf %88, %91 : vector<16x128xf32>
    %cst_17 = arith.constant 0.000000e+00 : f32
    %93 = vector.broadcast %cst_17 : f32 to vector<16x128xf32>
    %94 = arith.subf %93, %92 : vector<16x128xf32>
    %cst_18 = arith.constant 1.562500e+00 : f32
    %95 = vector.broadcast %cst_18 : f32 to vector<16x128xf32>
    %96 = arith.mulf %94, %95 : vector<16x128xf32>
    %97 = math.exp %96 : vector<16x128xf32>
    %cst_19 = arith.constant dense<0.000000e+00> : vector<16x128xf32>
    %98 = tpu.matmul %40, %64, %cst_19 {dimension_numbers = #tpu.dot_dimension_numbers<[1], [0], [0], [1], [0, 0, 1, 1], [], []>} : vector<16x64xf32>, vector<64x128xf32>, vector<16x128xf32> -> vector<16x128xf32>
    %99 = arith.mulf %98, %97 : vector<16x128xf32>
    %c0_20 = arith.constant 0 : index
    %c0_21 = arith.constant 0 : index
    %100 = vector.load %arg5[%c0_20, %c0_21] : memref<128x512xf32, #tpu.memory_space<vmem>>, vector<128x512xf32>
    %cst_22 = arith.constant dense<0.000000e+00> : vector<16x512xf32>
    %101 = tpu.matmul %99, %100, %cst_22 {dimension_numbers = #tpu.dot_dimension_numbers<[1], [0], [0], [1], [0, 0, 1, 1], [], []>} : vector<16x128xf32>, vector<128x512xf32>, vector<16x512xf32> -> vector<16x512xf32>
    %c0_23 = arith.constant 0 : index
    %c0_24 = arith.constant 0 : index
    %102 = vector.load %arg6[%c0_23, %c0_24] : memref<512x32xf32, #tpu.memory_space<vmem>>, vector<512x32xf32>
    %c0_25 = arith.constant 0 : index
    %c0_26 = arith.constant 0 : index
    %103 = vector.load %arg7[%c0_25, %c0_26] : memref<32x512xf32, #tpu.memory_space<vmem>>, vector<32x512xf32>
    %cst_27 = arith.constant dense<0.000000e+00> : vector<16x32xf32>
    %104 = tpu.matmul %101, %102, %cst_27 {dimension_numbers = #tpu.dot_dimension_numbers<[1], [0], [0], [1], [0, 0, 1, 1], [], []>} : vector<16x512xf32>, vector<512x32xf32>, vector<16x32xf32> -> vector<16x32xf32>
    %105 = arith.mulf %101, %101 : vector<16x512xf32>
    %cst_28 = arith.constant dense<0.000000e+00> : vector<16x32xf32>
    %106 = tpu.matmul %105, %102, %cst_28 {dimension_numbers = #tpu.dot_dimension_numbers<[1], [0], [0], [1], [0, 0, 1, 1], [], []>} : vector<16x512xf32>, vector<512x32xf32>, vector<16x32xf32> -> vector<16x32xf32>
    %cst_29 = arith.constant dense<0.000000e+00> : vector<32xf32>
    %107 = vector.multi_reduction <add>, %104, %cst_29 [0] : vector<16x32xf32> to vector<32xf32>
    %108 = vector.shape_cast %107 : vector<32xf32> to vector<1x32xf32>
    %cst_30 = arith.constant 3.906250e-03 : f32
    %109 = vector.broadcast %cst_30 : f32 to vector<1x32xf32>
    %110 = arith.mulf %108, %109 : vector<1x32xf32>
    %cst_31 = arith.constant dense<0.000000e+00> : vector<32xf32>
    %111 = vector.multi_reduction <add>, %106, %cst_31 [0] : vector<16x32xf32> to vector<32xf32>
    %112 = vector.shape_cast %111 : vector<32xf32> to vector<1x32xf32>
    %cst_32 = arith.constant 3.906250e-03 : f32
    %113 = vector.broadcast %cst_32 : f32 to vector<1x32xf32>
    %114 = arith.mulf %112, %113 : vector<1x32xf32>
    %115 = arith.mulf %110, %110 : vector<1x32xf32>
    %116 = arith.subf %114, %115 : vector<1x32xf32>
    %cst_33 = arith.constant 0.000000e+00 : f32
    %117 = vector.broadcast %cst_33 : f32 to vector<1x32xf32>
    %118 = arith.maximumf %116, %117 : vector<1x32xf32>
    %cst_34 = arith.constant 9.99999974E-6 : f32
    %119 = vector.broadcast %cst_34 : f32 to vector<1x32xf32>
    %120 = arith.addf %118, %119 : vector<1x32xf32>
    %121 = math.rsqrt %120 : vector<1x32xf32>
    %122 = vector.shape_cast %110 : vector<1x32xf32> to vector<1x32xf32>
    %123 = vector.broadcast %122 : vector<1x32xf32> to vector<16x32xf32>
    %cst_35 = arith.constant dense<0.000000e+00> : vector<16x512xf32>
    %124 = tpu.matmul %123, %103, %cst_35 {dimension_numbers = #tpu.dot_dimension_numbers<[1], [0], [0], [1], [0, 0, 1, 1], [], []>} : vector<16x32xf32>, vector<32x512xf32>, vector<16x512xf32> -> vector<16x512xf32>
    %125 = vector.shape_cast %121 : vector<1x32xf32> to vector<1x32xf32>
    %126 = vector.broadcast %125 : vector<1x32xf32> to vector<16x32xf32>
    %cst_36 = arith.constant dense<0.000000e+00> : vector<16x512xf32>
    %127 = tpu.matmul %126, %103, %cst_36 {dimension_numbers = #tpu.dot_dimension_numbers<[1], [0], [0], [1], [0, 0, 1, 1], [], []>} : vector<16x32xf32>, vector<32x512xf32>, vector<16x512xf32> -> vector<16x512xf32>
    %128 = arith.subf %101, %124 : vector<16x512xf32>
    %129 = arith.mulf %128, %127 : vector<16x512xf32>
    %cst_37 = arith.constant 0.000000e+00 : f32
    %130 = vector.broadcast %cst_37 : f32 to vector<16x512xf32>
    %131 = arith.maximumf %129, %130 : vector<16x512xf32>
    %c0_38 = arith.constant 0 : index
    %c0_39 = arith.constant 0 : index
    %c0_40 = arith.constant 0 : index
    %132 = vector.load %arg8[%c0_38, %c0_39, %c0_40] : memref<1x16x512xf32, #tpu.memory_space<vmem>>, vector<1x16x512xf32>
    %133 = vector.shape_cast %132 : vector<1x16x512xf32> to vector<16x512xf32>
    %134 = vector.shape_cast %131 : vector<16x512xf32> to vector<1x16x512xf32>
    tpu.vector_store %arg8[%c0_38, %c0_39, %c0_40], %134 {strides = array<i32>} : memref<1x16x512xf32, #tpu.memory_space<vmem>>, vector<1x16x512xf32>,
    return
  }
  func.func @transform_0(%arg0: i32) -> (i32, i32) {
    %c0_i32 = arith.constant 0 : i32
    %c0_i32_0 = arith.constant 0 : i32
    %c0_i32_1 = arith.constant 0 : i32
    return %c0_i32, %c0_i32_0 : i32, i32
  }
  func.func @transform_1(%arg0: i32) -> (i32, i32) {
    %c0_i32 = arith.constant 0 : i32
    %c0_i32_0 = arith.constant 0 : i32
    %c0_i32_1 = arith.constant 0 : i32
    return %c0_i32, %c0_i32_0 : i32, i32
  }
  func.func @transform_2(%arg0: i32) -> (i32, i32, i32) {
    %c0_i32 = arith.constant 0 : i32
    %c0_i32_0 = arith.constant 0 : i32
    %c0_i32_1 = arith.constant 0 : i32
    return %arg0, %c0_i32, %c0_i32_0 : i32, i32, i32
  }
  func.func @transform_3(%arg0: i32) -> (i32, i32) {
    %c0_i32 = arith.constant 0 : i32
    %c0_i32_0 = arith.constant 0 : i32
    %c0_i32_1 = arith.constant 0 : i32
    return %c0_i32, %c0_i32_0 : i32, i32
  }
  func.func @transform_4(%arg0: i32) -> (i32, i32) {
    %c0_i32 = arith.constant 0 : i32
    %c0_i32_0 = arith.constant 0 : i32
    %c0_i32_1 = arith.constant 0 : i32
    return %c0_i32, %c0_i32_0 : i32, i32
  }
  func.func @transform_5(%arg0: i32) -> (i32, i32) {
    %c0_i32 = arith.constant 0 : i32
    %c0_i32_0 = arith.constant 0 : i32
    %c0_i32_1 = arith.constant 0 : i32
    return %c0_i32, %c0_i32_0 : i32, i32
  }
  func.func @transform_6(%arg0: i32) -> (i32, i32) {
    %c0_i32 = arith.constant 0 : i32
    %c0_i32_0 = arith.constant 0 : i32
    %c0_i32_1 = arith.constant 0 : i32
    return %c0_i32, %c0_i32_0 : i32, i32
  }
  func.func @transform_7(%arg0: i32) -> (i32, i32, i32) {
    %c0_i32 = arith.constant 0 : i32
    %c0_i32_0 = arith.constant 0 : i32
    %c0_i32_1 = arith.constant 0 : i32
    return %arg0, %c0_i32, %c0_i32_0 : i32, i32, i32
  }
}

</mosaic_0001>

<bundles_post_ra>
// kernel: tpu_custom_call.1
= control target key start
LH: loop header
LB: loop body
LE: loop exit
PB: predicated region body
PF: predicated region fallthrough
CT: control target
= control target key end

     0   :  { %12 = vsyncpa [#allocation3], 0  ;;  %s3234_s0 = inlined_call_operand.vmem [shape: f32[64,3], index: 0, kind: input, shape index: {}]   ;;  %s3235_s1 = inlined_call_operand.vmem [shape: f32[3,64], index: 1, kind: input, shape index: {}]   ;;  %s3236_s2 = inlined_call_operand.vmem [shape: f32[2,16,3], index: 2, kind: input, shape index: {}]   ;;  %s3237_s3 = inlined_call_operand.vmem [shape: f32[3,128], index: 3, kind: input, shape index: {}]   ;;  %s3238_s4 = inlined_call_operand.vmem [shape: f32[128,512], index: 4, kind: input, shape index: {}]   ;;  %s3239_s5 = inlined_call_operand.vmem [shape: f32[512,32], index: 5, kind: input, shape index: {}]   ;;  %s3240_s6 = inlined_call_operand.vmem [shape: f32[32,512], index: 6, kind: input, shape index: {}]   ;;  %s3241_s7 = inlined_call_operand.hbm [shape: f32[2,16,512], index: 7, kind: output, shape index: {}]  }
   0x1   :  { %14 = vsyncpa [#allocation3 + $0x1], 0  ;;  %s2388_s24 = smov 0   ;;  %s2390_s25 = smov 0  }
   0x2   :  { %s2392_s26 = smov 0   ;;  %s2394_s27 = smov 0  }
   0x3 LB: > { %s2409_s28 = sadd.s32 4294967295, %s2339_s27   ;;  %s1744_s29 = sadd.s32 4294967294, %s2339_s27   ;;  %s2339_s27 = sphi %s2394_s27, %s3247_s27   ;;  %s2335_s26 = sphi %s2392_s26, %s3246_s26   ;;  %s2331_s25 = sphi %s2390_s25, %s3245_s25   ;;  %s2327_s24 = sphi %s2388_s24, %s3244_s24  }
   0x4   : > { %s2413_s30 = sadd.s32 1, %s2339_s27   ;;  %s179_s8 = sadd.s32 1, %s2335_s26 }
   0x5   : > { %s176_s9 = ssub.s32 %s2339_s27, %s2413_s30  ;;  %p189_p0 = scmp.ne.s32.totalorder %s2335_s26, %s2331_s25 }
   0x6   : > { %p177_p1 = scmp.eq.s32.totalorder %s176_s9, 0  ;;  %p190_p2 = scmp.eq.s32.totalorder %s2409_s28, 1 }
   0x7   : > { %p195_p3 = scmp.ne.s32.totalorder %s2331_s25, %s2327_s24  ;;  %p196_p4 = scmp.eq.s32.totalorder %s1744_s29, 1 }
   0x8   : > { %s2424_s10 = scalar_select %p177_p1, %s2335_s26, %s179_s8  }
   0x9   : > { %p2426_p5 = por %p190_p2, %p189_p0  ;;  %p2430_p6 = por %p196_p4, %p195_p3 }
   0xa   : > { %p1747_p7 = scmp.ge.s32.totalorder %s2339_s27, 1  ;;  %p240_p8 = scmp.lt.s32.totalorder %s2339_s27, 3 }
   0xc   : > { %p241_p9 = pnand %p1747_p7, %p240_p8 }
   0xd   : > { %p272_p10 = scmp.lt.s32.totalorder (!%p241_p9), %s2409_s28, 1  ;;  %v2341_v0 = vmov (!%p241_p9), 1   ;;  %v2342_v1 = vmov (!%p241_p9), 0   ;;  %v2343_v4 = vmov (!%p241_p9), 2   ;;  %v279_v5 = vld [vmem:[%s3234_s0 + $0x10] sm:$0xff] (!%p241_p9)  ;;  %v277_v6 = vld [vmem:[%s3234_s0] sm:$0xff] (!%p241_p9)  ;;  %v299_v16 = vlaneseq (!%p241_p9) }
   0xe   : > { %244 = sbr.rel (%p241_p9) target bundleno = 1285 (0x505), region = 48  ;;  %2236 = vset.pattern.permute.xlu0 (!%p241_p9), %v2341_v0  ;;  %2237 = vset.pattern.permute.xlu1 (!%p241_p9), %v2342_v1  ;;  %v282_v7 = vld [vmem:[%s3234_s0 + $0x28] sm:$0xff] (!%p241_p9)  ;;  %v2344_v8 = vmov (!%p241_p9), 0.0   ;;  %v284_v10 = vld [vmem:[%s3234_s0 + $0x38] sm:$0xff] (!%p241_p9)  ;;  %v281_v12 = vld [vmem:[%s3234_s0 + $0x20] sm:$0xff] (!%p241_p9)  ;;  %vm584_vm0 = vcmask (!%p241_p9), 1042432  }
   0xf   : > { %818 = vmatprep.mubr.f32.mxu1 (!%p241_p9), %v2344_v8  ;;  %v278_v9 = vld [vmem:[%s3234_s0 + $0x8] sm:$0xff] (!%p241_p9)  ;;  %v280_v11 = vld [vmem:[%s3234_s0 + $0x18] sm:$0xff] (!%p241_p9)  ;;  %v283_v13 = vld [vmem:[%s3234_s0 + $0x30] sm:$0xff] (!%p241_p9)  ;;  %v300_v18 = vshrl.u32 (!%p241_p9), %v299_v16, 7  ;;  %vm349_vm1 = vcmask (!%p241_p9), 523264   ;;  %vm1296_vm4 = vcmask (!%p241_p9), 261120  }
  0x10   : > { %v288_v14 = vld [vmem:[%s3237_s3] sm:$0x7] (!%p241_p9)  ;;  %s269_s18 = sand.u32 (!%p241_p9), 1, %s2331_s25   ;;  %s1769_s20 = sshll.u32 (!%p241_p9), %s2409_s28, 10 }
  0x11   : > { %v583_v15 = vmul.f32 (!%p241_p9), %v288_v14, %v288_v14  ;;  %v315_v20 = vsub.s32 (!%p241_p9), 1, %v300_v18  ;;  %v301_v21 = vsub.s32 (!%p241_p9), 0, %v300_v18  ;;  %v329_v26 = vsub.s32 (!%p241_p9), 2, %v300_v18  ;;  %v285_v27 = vld [vmem:[%s3235_s1] sm:$0x7] (!%p241_p9)  ;;  %s1748_s19 = sshll.u32 (!%p241_p9), %s269_s18, 6 }
  0x12   : > { %s271_s21 = scalar_lea.vmem (!%p241_p9), [#allocation2], %s1748_s19  ;;  %s3193_s8 = scalar_lea.sflag (!%p241_p9), [#allocation3], %s269_s18 }
  0x13   : > { %v585_v17 = vsel (!%p241_p9), %vm584_vm0, %v583_v15, 0.0  ;;  %v2469_v23 = vrot.slane (!%p241_p9), %v288_v14, %v315_v20  ;;  %v2471_v24 = vrot.slane (!%p241_p9), %v288_v14, %v301_v21  ;;  %v302_v29 = vrot.slane (!%p241_p9), %v285_v27, %v301_v21  ;;  %s1682_s22 = sshll.u32 (!%p241_p9), %s271_s21, 4  ;;  %s3189_s22 = int_to_ptr.vmem [resolvable:$true] %s1682_s22 }
  0x14   : > { %v586_v19 = vrot.slane (!%p241_p9), %v585_v17, 4  ;;  %v330_v34 = vrot.slane (!%p241_p9), %v285_v27, %v329_v26  ;;  %v2478_v35 = vrot.slane (!%p241_p9), %v288_v14, %v329_v26  ;;  %v316_v36 = vrot.slane (!%p241_p9), %v285_v27, %v315_v20  ;;  %s2277_s9 = scalar_lea.vmem (!%p241_p9), %s3189_s22, 1024 }
  0x15   : > { %s273_s13 = scalar_select %p272_p10, %s2409_s28, 1 }
  0x16   : > { %v587_v22 = vadd.f32 %v586_v19, %v585_v17  ;;  %s3187_s28 = scalar_lea.hbm %s3241_s7, %s1769_s20  ;;  %p2278_p11 = scmp.ne.s32.totalorder %s3189_s22, %s2277_s9 }
  0x17   : > { %s1768_s14 = sshll.u32 %s273_s13, 4  ;;  %s2345_s13 = smov [#allocation2]  }
  0x18   : > { %s276_s17 = scalar_lea.vmem %s3236_s2, %s1768_s14  ;;  %v588_v25 = vrot.slane %v587_v22, 2  ;;  %p2279_p12 = pnand %p2278_p11, %p2426_p5 }
  0x19   : > { %v287_v2 = vld [vmem:[%s276_s17 + $0x8] sm:$0xff]  ;;  %v286_v3 = vld [vmem:[%s276_s17] sm:$0xff]  ;;  %s2281_s14 = sshll.u32 %s2345_s13, 4  ;;  %s2282_s14 = int_to_ptr.vmem [resolvable:$false] %s2281_s14 }
  0x1a   : > { %296 = vperm.xlu1 %2237, %v287_v2   ;;  %306 = vperm.xlu0 %2236, %v286_v3   ;;  %v589_v33 = vadd.f32 %v588_v25, %v587_v22  ;;  %p2280_p13 = pneg %p2279_p12  ;;  %s2283_s15 = scalar_lea.vmem %s2282_s14, 2048 }
  0x1b   : > { %p2284_p0 = scmp.lt.s32.totalorder %s3189_s22, %s2282_s14  ;;  %p2285_p1 = scmp.lt.s32.totalorder %s2283_s15, %s2277_s9 }
  0x1c   : > { %v590_v39 = vrot.slane %v589_v33, 1 }
  0x1d   : > { %p2286_p2 = por %p2285_p1, %p2284_p0 }
  0x1e   : > { %2238 = vset.pattern.permute.xlu1 %v2341_v0  ;;  %2240 = vset.pattern.permute.xlu0 %v2343_v4  ;;  %v591_v50 = vadd.f32 %v590_v39, %v589_v33 }
  0x1f   : > { %310 = vperm.xlu1 %2238, %v287_v2   ;;  %324 = vperm.xlu0 %2240, %v287_v2   ;;  %p2287_p3 = pnand %p2286_p2, %p2280_p13 }
  0x23   : > { %2239 = vset.pattern.permute.xlu1 %v2343_v4  ;;  %2241 = vset.pattern.permute.xlu0 %v2342_v1 }
  0x24   : > { %320 = vperm.xlu1 %2239, %v286_v3   ;;  %291 = vperm.xlu0 %2241, %v286_v3  }
  0x28   : > { %2242 = vset.pattern.permute.xlu1 %v2342_v1  ;;  %384 = vperm.xlu0 %2241, %v279_v5  }
  0x29   : > { %374 = vperm.xlu1 %2242, %v277_v6  }
  0x2c   : > { %399 = vperm.xlu0 %2241, %v282_v7  }
  0x2d   : > { %379 = vperm.xlu1 %2242, %v278_v9  }
  0x30   : > { %409 = vperm.xlu0 %2241, %v284_v10  }
  0x31   : > { %389 = vperm.xlu1 %2242, %v280_v11  }
  0x34   : > { %2244 = vset.pattern.permute.xlu0 %v2341_v0 }
  0x35   : > { %394 = vperm.xlu1 %2242, %v281_v12   ;;  %429 = vperm.xlu0 %2244, %v278_v9  }
  0x39   : > { %404 = vperm.xlu1 %2242, %v283_v13   ;;  %441 = vperm.xlu0 %2244, %v281_v12  }
  0x3d   : > { %2243 = vset.pattern.permute.xlu1 %v2341_v0  ;;  %449 = vperm.xlu0 %2244, %v283_v13  }
  0x3e   : > { %425 = vperm.xlu1 %2243, %v277_v6  }
  0x41   : > { %2245 = vset.pattern.permute.xlu0 %v2343_v4 }
  0x42   : > { %433 = vperm.xlu1 %2243, %v279_v5   ;;  %477 = vperm.xlu0 %2245, %v277_v6  }
  0x46   : > { %437 = vperm.xlu1 %2243, %v280_v11   ;;  %489 = vperm.xlu0 %2245, %v280_v11  }
  0x4a   : > { %445 = vperm.xlu1 %2243, %v282_v7   ;;  %497 = vperm.xlu0 %2245, %v282_v7  }
  0x4e   : > { %453 = vperm.xlu1 %2243, %v284_v10   ;;  %505 = vperm.xlu0 %2245, %v284_v10  }
  0x52   : > { %2246 = vset.pattern.permute.xlu1 %v2343_v4 }
  0x53   : > { %481 = vperm.xlu1 %2246, %v278_v9  }
  0x57   : > { %485 = vperm.xlu1 %2246, %v279_v5  }
  0x5b   : > { %493 = vperm.xlu1 %2246, %v281_v12  }
  0x5f   : > { %501 = vperm.xlu1 %2246, %v283_v13  }
  0x99   : > { %v307_v28 = vpop.permute.xlu0 %306  ;;  %v297_v30 = vpop.permute.xlu1 %296 }
  0x9a   : > { %v575_v31 = vmul.f32 %v2469_v23, %v307_v28  ;;  %v574_v32 = vmul.f32 %v2471_v24, %v297_v30  ;;  %v304_v37 = vsub.f32 %v297_v30, %v302_v29  ;;  %v317_v48 = vsub.f32 %v307_v28, %v316_v36 }
  0x9c   : > { %v334_v45 = vmul.f32 %v304_v37, %v304_v37  ;;  %v335_v61 = vmul.f32 %v317_v48, %v317_v48 }
  0x9e   : > { %v311_v38 = vpop.permute.xlu1 %310  ;;  %v325_v40 = vpop.permute.xlu0 %324 }
  0x9f   : > { %v318_v41 = vsub.f32 %v311_v38, %v316_v36  ;;  %v576_v42 = vmul.f32 %v2469_v23, %v311_v38  ;;  %v332_v43 = vsub.f32 %v325_v40, %v330_v34  ;;  %v580_v44 = vmul.f32 %v2478_v35, %v325_v40 }
  0xa1   : > { %v336_v46 = vmul.f32 %v318_v41, %v318_v41  ;;  %v578_v47 = vadd.f32 %v576_v42, %v574_v32  ;;  %v340_v51 = vmul.f32 %v332_v43, %v332_v43 }
  0xa3   : > { %v338_v49 = vadd.f32 %v336_v46, %v334_v45  ;;  %v582_v52 = vadd.f32 %v580_v44, %v578_v47  ;;  %v292_v53 = vpop.permute.xlu0 %291  ;;  %v321_v54 = vpop.permute.xlu1 %320 }
  0xa4   : > { %v303_v55 = vsub.f32 %v292_v53, %v302_v29  ;;  %v573_v56 = vmul.f32 %v2471_v24, %v292_v53  ;;  %v331_v57 = vsub.f32 %v321_v54, %v330_v34  ;;  %v579_v58 = vmul.f32 %v2478_v35, %v321_v54 }
  0xa5   : > { %v342_v59 = vadd.f32 %v340_v51, %v338_v49  ;;  %v593_v60 = vmul.f32 2.0, %v582_v52 }
  0xa6   : > { %v333_v62 = vmul.f32 %v303_v55, %v303_v55  ;;  %v577_v63 = vadd.f32 %v575_v31, %v573_v56  ;;  %v339_v0 = vmul.f32 %v331_v57, %v331_v57 }
  0xa7   : > { %v357_v1 = vsub.f32 0.0, %v342_v59  ;;  %v2484_v2 = vadd.f32 %v593_v60, %v591_v50  ;;  %v385_v3 = vpop.permute.xlu0 %384  ;;  %vm344_vm2 = vcmp.lt.f32.partialorder %v342_v59, 0.64 }
  0xa8   : > { %v337_v4 = vadd.f32 %v335_v61, %v333_v62  ;;  %v581_v5 = vadd.f32 %v579_v58, %v577_v63  ;;  %v375_v6 = vpop.permute.xlu1 %374  ;;  %v1752_v7 = vsel %vm344_vm2, 1.0, %v2344_v8  ;;  %v418_v51 = vmul.f32 %v2471_v24, %v385_v3 }
  0xa9   : > { %v359_v9 = vmul.f32 1.5625, %v357_v1  ;;  %v353_v10 = vsel %vm349_vm1, %v1752_v7, 0.0  ;;  %v416_v41 = vmul.f32 %v2471_v24, %v375_v6 }
  0xaa   : > { %v341_v11 = vadd.f32 %v339_v0, %v337_v4  ;;  %v592_v12 = vmul.f32 2.0, %v581_v5  ;;  %354 = vadd.xlane.f32.xlu0 %v353_v10  ;;  %v691_v10 = vld [vmem:[%s3238_s4 + $0x8] sm:$0xff] }
  0xab   : > { %v362_v13 = vmul.f32 1.442695, %v359_v9  ;;  %v400_v14 = vpop.permute.xlu0 %399 }
  0xac   : > { %v356_v15 = vsub.f32 0.0, %v341_v11  ;;  %v2488_v16 = vadd.f32 %v592_v12, %v591_v50  ;;  %v380_v17 = vpop.permute.xlu1 %379  ;;  %vm343_vm3 = vcmp.lt.f32.partialorder %v341_v11, 0.64  ;;  %v421_v0 = vmul.f32 %v2471_v24, %v400_v14  ;;  %v695_v11 = vld [vmem:[%s3238_s4 + $0x28] sm:$0xff] }
  0xad   : > { %2247 = vpow2.f32 %v362_v13  ;;  %v1751_v18 = vsel %vm343_vm3, 1.0, %v2344_v8  ;;  %v417_v26 = vmul.f32 %v2471_v24, %v380_v17  ;;  %v694_v17 = vld [vmem:[%s3238_s4 + $0x20] sm:$0xff] }
  0xae   : > { %v358_v19 = vmul.f32 1.5625, %v356_v15  ;;  %v350_v20 = vsel %vm349_vm1, %v1751_v18, 0.0  ;;  %v1967_v15 = vpack.c.bf16 %v695_v11, %v691_v10 }
  0xaf   : > { %351 = vadd.xlane.f32.xlu1 %v350_v20  ;;  %v410_v22 = vpop.permute.xlu0 %409 }
  0xb0   : > { %v360_v21 = vmul.f32 1.442695, %v358_v19  ;;  %v390_v25 = vpop.permute.xlu1 %389  ;;  %v423_v6 = vmul.f32 %v2471_v24, %v410_v22  ;;  %v699_v19 = vld [vmem:[%s3238_s4 + $0x48] sm:$0xff]  ;;  %1968 = vmatprep.subr.bf16.mxu1 %v1967_v15  ;;  %v698_v22 = vld [vmem:[%s3238_s4 + $0x40] sm:$0xff] }
  0xb1   : > { %v419_v54 = vmul.f32 %v2471_v24, %v390_v25  ;;  %v702_v25 = vld [vmem:[%s3238_s4 + $0x60] sm:$0xff] }
  0xb2   : > { %2249 = vpow2.f32 %v360_v21 }
  0xb4   : > { %v395_v27 = vpop.permute.xlu1 %394  ;;  %v430_v28 = vpop.permute.xlu0 %429 }
  0xb5   : > { %v461_v29 = vmul.f32 %v2469_v23, %v430_v28  ;;  %v420_v31 = vmul.f32 %v2471_v24, %v395_v27  ;;  %v1973_v28 = vpack.c.bf16 %v702_v25, %v698_v22 }
  0xb7   : > { %v2248_v30 = vpop.eup %2247  ;;  %v2495_v32 = vadd.f32 %v461_v29, %v417_v26  ;;  %v707_v29 = vld [vmem:[%s3238_s4 + $0x88] sm:$0xff] }
  0xb8   : > { %v2497_v33 = vmul.f32 %v2248_v30, %v1752_v7  ;;  %v405_v34 = vpop.permute.xlu1 %404  ;;  %v442_v36 = vpop.permute.xlu0 %441  ;;  %v711_v30 = vld [vmem:[%s3238_s4 + $0xa8] sm:$0xff] }
  0xb9   : > { %v464_v37 = vmul.f32 %v2469_v23, %v442_v36  ;;  %v422_v38 = vmul.f32 %v2471_v24, %v405_v34  ;;  %v690_v24 = vld [vmem:[%s3238_s4] sm:$0xff]  ;;  %v1975_v34 = vpack.c.bf16 %v711_v30, %v707_v29 }
  0xba   : > { %v706_v36 = vld [vmem:[%s3238_s4 + $0x80] sm:$0xff] }
  0xbb   : > { %v2501_v39 = vadd.f32 %v464_v37, %v420_v31 }
  0xbc   : > { %v2250_v40 = vpop.eup %2249  ;;  %v450_v42 = vpop.permute.xlu0 %449 }
  0xbd   : > { %v2504_v43 = vmul.f32 %v2250_v40, %v1751_v18  ;;  %v426_v44 = vpop.permute.xlu1 %425  ;;  %v466_v45 = vmul.f32 %v2469_v23, %v450_v42  ;;  %v1969_v18 = vpack.c.bf16 %v694_v17, %v690_v24  ;;  %v738_v24 = vld [vmem:[%s3238_s4 + $0x180] sm:$0xff] }
  0xbe   : > { %v460_v46 = vmul.f32 %v2469_v23, %v426_v44  ;;  %v715_v44 = vld [vmem:[%s3238_s4 + $0xc8] sm:$0xff] }
  0xbf   : > { %v2508_v47 = vadd.f32 %v466_v45, %v422_v38  ;;  %1970 = vmatpush1.bf16.msra.mxu1 %v1969_v18  ;;  %v710_v38 = vld [vmem:[%s3238_s4 + $0xa0] sm:$0xff]  ;;  %v719_v45 = vld [vmem:[%s3238_s4 + $0xe8] sm:$0xff] }
  0xc0   : > { %v468_v48 = vadd.f32 %v460_v46, %v416_v41  ;;  %v1977_v41 = vpack.c.bf16 %v710_v38, %v706_v36 }
  0xc1   : > { %v434_v49 = vpop.permute.xlu1 %433  ;;  %v478_v50 = vpop.permute.xlu0 %477 }
  0xc2   : > { %v462_v52 = vmul.f32 %v2469_v23, %v434_v49  ;;  %v512_v53 = vmul.f32 %v2478_v35, %v478_v50  ;;  %v1979_v49 = vpack.c.bf16 %v719_v45, %v715_v44  ;;  %v718_v50 = vld [vmem:[%s3238_s4 + $0xe0] sm:$0xff] }
  0xc4   : > { %v470_v55 = vadd.f32 %v462_v52, %v418_v51  ;;  %v2514_v56 = vadd.f32 %v512_v53, %v468_v48 }
  0xc5   : > { %v438_v57 = vpop.permute.xlu1 %437  ;;  %v490_v58 = vpop.permute.xlu0 %489 }
  0xc6   : > { %v463_v59 = vmul.f32 %v2469_v23, %v438_v57  ;;  %v515_v60 = vmul.f32 %v2478_v35, %v490_v58  ;;  %v727_v57 = vld [vmem:[%s3238_s4 + $0x128] sm:$0xff] }
  0xc8   : > { %v471_v61 = vadd.f32 %v463_v59, %v419_v54  ;;  %v723_v54 = vld [vmem:[%s3238_s4 + $0x108] sm:$0xff] }
  0xc9   : > { %v446_v62 = vpop.permute.xlu1 %445  ;;  %v498_v63 = vpop.permute.xlu0 %497  ;;  %v1983_v59 = vpack.c.bf16 %v727_v57, %v723_v54 }
  0xca   : > { %v2519_v1 = vadd.f32 %v515_v60, %v471_v61  ;;  %v465_v3 = vmul.f32 %v2469_v23, %v446_v62  ;;  %v517_v4 = vmul.f32 %v2478_v35, %v498_v63  ;;  %v722_v60 = vld [vmem:[%s3238_s4 + $0x100] sm:$0xff] }
  0xcc   : > { %v473_v5 = vadd.f32 %v465_v3, %v421_v0  ;;  %v731_v0 = vld [vmem:[%s3238_s4 + $0x148] sm:$0xff] }
  0xcd   : > { %v454_v7 = vpop.permute.xlu1 %453  ;;  %v506_v9 = vpop.permute.xlu0 %505  ;;  %v735_v3 = vld [vmem:[%s3238_s4 + $0x168] sm:$0xff] }
  0xce   : > { %v2530_v12 = vadd.f32 %v517_v4, %v473_v5  ;;  %v467_v13 = vmul.f32 %v2469_v23, %v454_v7  ;;  %v519_v14 = vmul.f32 %v2478_v35, %v506_v9  ;;  %v703_v23 = vld [vmem:[%s3238_s4 + $0x68] sm:$0xff]  ;;  %v734_v7 = vld [vmem:[%s3238_s4 + $0x160] sm:$0xff] }
  0xcf   : > { %v1971_v21 = vpack.c.bf16 %v703_v23, %v699_v19 }
  0xd0   : > { %v475_v20 = vadd.f32 %v467_v13, %v423_v6  ;;  %v1987_v6 = vpack.c.bf16 %v735_v3, %v731_v0  ;;  %v739_v13 = vld [vmem:[%s3238_s4 + $0x188] sm:$0xff] }
  0xd1   : > { %1972 = vmatprep.subr.bf16.mxu1 %v1971_v21 }
  0xd2   : > { %v2552_v26 = vadd.f32 %v519_v14, %v475_v20  ;;  %v482_v27 = vpop.permute.xlu1 %481  ;;  %1974 = vmatpush1.bf16.msra.mxu1 %v1973_v28 }
  0xd3   : > { %v513_v31 = vmul.f32 %v2478_v35, %v482_v27  ;;  %1976 = vmatprep.subr.bf16.mxu1 %v1975_v34 }
  0xd4   : > { %v531_v37 = vmax.f32 %v2519_v1, %v2552_v26 }
  0xd5   : > { %v2570_v40 = vadd.f32 %v513_v31, %v2495_v32  ;;  %v714_v32 = vld [vmem:[%s3238_s4 + $0xc0] sm:$0xff] }
  0xd6   : > { %v486_v42 = vpop.permute.xlu1 %485  ;;  %1978 = vmatpush1.bf16.msra.mxu1 %v1977_v41  ;;  %v1981_v52 = vpack.c.bf16 %v718_v50, %v714_v32 }
  0xd7   : > { %v529_v46 = vmax.f32 %v2570_v40, %v2530_v12  ;;  %v514_v48 = vmul.f32 %v2478_v35, %v486_v42  ;;  %1980 = vmatprep.subr.bf16.mxu1 %v1979_v49 }
  0xd9   : > { %v522_v51 = vadd.f32 %v514_v48, %v470_v55  ;;  %v726_v55 = vld [vmem:[%s3238_s4 + $0x120] sm:$0xff] }
  0xda   : > { %v494_v53 = vpop.permute.xlu1 %493  ;;  %1982 = vmatpush1.bf16.msra.mxu1 %v1981_v52  ;;  %v1985_v62 = vpack.c.bf16 %v726_v55, %v722_v60 }
  0xdb   : > { %v516_v58 = vmul.f32 %v2478_v35, %v494_v53  ;;  %1984 = vmatprep.subr.bf16.mxu1 %v1983_v59 }
  0xdd   : > { %v524_v61 = vadd.f32 %v516_v58, %v2501_v39  ;;  %v730_v39 = vld [vmem:[%s3238_s4 + $0x140] sm:$0xff] }
  0xde   : > { %v502_v63 = vpop.permute.xlu1 %501  ;;  %1986 = vmatpush1.bf16.msra.mxu1 %v1985_v62  ;;  %v1989_v11 = vpack.c.bf16 %v734_v7, %v730_v39  ;;  %v693_v39 = vld [vmem:[%s3238_s4 + $0x18] sm:$0xff] }
  0xdf   : > { %v528_v4 = vmax.f32 %v2514_v56, %v524_v61  ;;  %v518_v5 = vmul.f32 %v2478_v35, %v502_v63  ;;  %1988 = vmatprep.subr.bf16.mxu1 %v1987_v6  ;;  %v743_v35 = vld [vmem:[%s3238_s4 + $0x1a8] sm:$0xff]  ;;  %v697_v7 = vld [vmem:[%s3238_s4 + $0x38] sm:$0xff] }
  0xe0   : > { %v1991_v15 = vpack.c.bf16 %v743_v35, %v739_v13 }
  0xe1   : > { %v532_v9 = vmax.f32 %v528_v4, %v529_v46  ;;  %v526_v10 = vadd.f32 %v518_v5, %v2508_v47  ;;  %v742_v47 = vld [vmem:[%s3238_s4 + $0x1a0] sm:$0xff] }
  0xe2   : > { %1990 = vmatpush1.bf16.msra.mxu1 %v1989_v11  ;;  %v1993_v18 = vpack.c.bf16 %v742_v47, %v738_v24  ;;  %v701_v47 = vld [vmem:[%s3238_s4 + $0x58] sm:$0xff] }
  0xe3   : > { %v530_v14 = vmax.f32 %v522_v51, %v526_v10  ;;  %1992 = vmatprep.subr.bf16.mxu1 %v1991_v15  ;;  %v696_v15 = vld [vmem:[%s3238_s4 + $0x30] sm:$0xff] }
  0xe5   : > { %v533_v17 = vmax.f32 %v530_v14, %v531_v37  ;;  %v692_v14 = vld [vmem:[%s3238_s4 + $0x10] sm:$0xff] }
  0xe6   : > { %1994 = vmatpush1.bf16.msra.mxu1 %v1993_v18 }
  0xe7   : > { %v534_v19 = vmax.f32 %v532_v9, %v533_v17  ;;  %v1999_v9 = vpack.c.bf16 %v697_v7, %v693_v39  ;;  %v705_v17 = vld [vmem:[%s3238_s4 + $0x78] sm:$0xff]  ;;  %v748_v7 = vld [vmem:[%s3238_s4 + $0x1d0] sm:$0xff] }
  0xe9   : > { %v535_v20 = vrot.slane %v534_v19, 4 }
  0xeb   : > { %v536_v23 = vmax.f32 %v534_v19, %v535_v20  ;;  %v2001_v20 = vpack.c.bf16 %v696_v15, %v692_v14  ;;  %v957_v15 = vld [vmem:[%s3239_s5 + $0x188] sm:$0xff] }
  0xed   : > { %v537_v21 = vrot.slane %v536_v23, 2 }
  0xef   : > { %v538_v22 = vmax.f32 %v536_v23, %v537_v21  ;;  %v2003_v21 = vpack.c.bf16 %v705_v17, %v701_v47 }
  0xf1   : > { %v539_v25 = vrot.slane %v538_v22, 1 }
  0xf3   : > { %v540_v27 = vmax.f32 %v538_v22, %v539_v25  ;;  %v700_v22 = vld [vmem:[%s3238_s4 + $0x50] sm:$0xff] }
  0xf4   : > { %v704_v25 = vld [vmem:[%s3238_s4 + $0x70] sm:$0xff] }
  0xf5   : > { %v547_v28 = vsub.f32 %v526_v10, %v540_v27  ;;  %v541_v29 = vsub.f32 %v2514_v56, %v540_v27  ;;  %v542_v30 = vsub.f32 %v2570_v40, %v540_v27  ;;  %v543_v31 = vsub.f32 %v522_v51, %v540_v27 }
  0xf6   : > { %v544_v34 = vsub.f32 %v2519_v1, %v540_v27  ;;  %v545_v36 = vsub.f32 %v524_v61, %v540_v27  ;;  %v546_v37 = vsub.f32 %v2530_v12, %v540_v27  ;;  %v548_v38 = vsub.f32 %v2552_v26, %v540_v27 }
  0xf7   : > { %v555_v41 = vmul.f32 3.125, %v547_v28  ;;  %v549_v42 = vmul.f32 3.125, %v541_v29  ;;  %v550_v44 = vmul.f32 3.125, %v542_v30  ;;  %v551_v45 = vmul.f32 3.125, %v543_v31  ;;  %v708_v29 = vld [vmem:[%s3238_s4 + $0x90] sm:$0xff]  ;;  %v717_v31 = vld [vmem:[%s3238_s4 + $0xd8] sm:$0xff] }
  0xf8   : > { %v552_v46 = vmul.f32 3.125, %v544_v34  ;;  %v553_v48 = vmul.f32 3.125, %v545_v36  ;;  %v554_v49 = vmul.f32 3.125, %v546_v37  ;;  %v556_v40 = vmul.f32 3.125, %v548_v38  ;;  %v712_v30 = vld [vmem:[%s3238_s4 + $0xb0] sm:$0xff]  ;;  %v721_v34 = vld [vmem:[%s3238_s4 + $0xf8] sm:$0xff] }
  0xf9   : > { %v569_v32 = vmul.f32 1.442695, %v555_v41  ;;  %v557_v50 = vmul.f32 1.442695, %v549_v42  ;;  %v559_v56 = vmul.f32 1.442695, %v550_v44  ;;  %v2009_v36 = vpack.c.bf16 %v712_v30, %v708_v29 }
  0xfa   : > { %v561_v52 = vmul.f32 1.442695, %v551_v45  ;;  %v563_v51 = vmul.f32 1.442695, %v552_v46  ;;  %v2633_v1 = vmul.f32 2.0, %v540_v27  ;;  %v709_v27 = vld [vmem:[%s3238_s4 + $0x98] sm:$0xff]  ;;  %v2011_v37 = vpack.c.bf16 %v721_v34, %v717_v31 }
  0xfb   : > { %2251 = vpow2.f32 %v569_v32  ;;  %v565_v12 = vmul.f32 1.442695, %v553_v48  ;;  %v567_v26 = vmul.f32 1.442695, %v554_v49  ;;  %v571_v57 = vmul.f32 1.442695, %v556_v40 }
  0xfc   : > { %2253 = vpow2.f32 %v557_v50  ;;  %v598_v53 = vsub.f32 %v2484_v2, %v2633_v1  ;;  %v597_v54 = vsub.f32 %v2488_v16, %v2633_v1  ;;  %v716_v38 = vld [vmem:[%s3238_s4 + $0xd0] sm:$0xff]  ;;  %v725_v42 = vld [vmem:[%s3238_s4 + $0x118] sm:$0xff]  ;;  %v940_v2 = vld [vmem:[%s3239_s5 + $0x100] sm:$0xff] }
  0xfd   : > { %2255 = vpow2.f32 %v559_v56  ;;  %v720_v41 = vld [vmem:[%s3238_s4 + $0xf0] sm:$0xff]  ;;  %v729_v44 = vld [vmem:[%s3238_s4 + $0x138] sm:$0xff]  ;;  %v941_v16 = vld [vmem:[%s3239_s5 + $0x108] sm:$0xff] }
  0xfe   : > { %2257 = vpow2.f32 %v561_v52  ;;  %v2013_v45 = vpack.c.bf16 %v720_v41, %v716_v38  ;;  %v2015_v46 = vpack.c.bf16 %v729_v44, %v725_v42  ;;  %v724_v48 = vld [vmem:[%s3238_s4 + $0x110] sm:$0xff]  ;;  %v733_v32 = vld [vmem:[%s3238_s4 + $0x158] sm:$0xff]  ;;  %v600_v47 = vsub.f32 0.0, %v598_v53 }
  0xff   : > { %2259 = vpow2.f32 %v563_v51  ;;  %v728_v49 = vld [vmem:[%s3238_s4 + $0x130] sm:$0xff]  ;;  %v737_v50 = vld [vmem:[%s3238_s4 + $0x178] sm:$0xff]  ;;  %v599_v17 = vsub.f32 0.0, %v597_v54  ;;  %v2802_v34 = vpack.c.bf16 %v941_v16, %v940_v2 }
 0x100   : > { %2261 = vpow2.f32 %v565_v12  ;;  %v2017_v56 = vpack.c.bf16 %v728_v49, %v724_v48  ;;  %v2019_v52 = vpack.c.bf16 %v737_v50, %v733_v32  ;;  %v732_v40 = vld [vmem:[%s3238_s4 + $0x150] sm:$0xff]  ;;  %v741_v12 = vld [vmem:[%s3238_s4 + $0x198] sm:$0xff]  ;;  %v960_v48 = vld [vmem:[%s3239_s5 + $0x1a0] sm:$0xff] }
 0x101   : > { %2263 = vpow2.f32 %v567_v26  ;;  %v736_v51 = vld [vmem:[%s3238_s4 + $0x170] sm:$0xff]  ;;  %v745_v26 = vld [vmem:[%s3238_s4 + $0x1b8] sm:$0xff]  ;;  %v961_v49 = vld [vmem:[%s3239_s5 + $0x1a8] sm:$0xff] }
 0x102   : > { %2265 = vpow2.f32 %v571_v57  ;;  %v2021_v57 = vpack.c.bf16 %v736_v51, %v732_v40  ;;  %v926_v1 = vld [vmem:[%s3239_s5 + $0x90] sm:$0xff]  ;;  %v943_v44 = vld [vmem:[%s3239_s5 + $0x118] sm:$0xff]  ;;  %v2850_v51 = vpack.c.bf16 %v961_v49, %v960_v48  ;;  %v953_v48 = vld [vmem:[%s3239_s5 + $0x168] sm:$0xff] }
 0x103   : > { %v942_v42 = vld [vmem:[%s3239_s5 + $0x110] sm:$0xff] }
 0x104   : > { %v2838_v50 = vpack.c.bf16 %v943_v44, %v942_v42  ;;  %v918_v16 = vld [vmem:[%s3239_s5 + $0x50] sm:$0xff]  ;;  %v921_v42 = vld [vmem:[%s3239_s5 + $0x68] sm:$0xff] }
 0x105   : > { %v2252_v58 = vpop.eup %2251  ;;  %v938_v49 = vld [vmem:[%s3239_s5 + $0xf0] sm:$0xff] }
 0x106   : > { %v2254_v59 = vpop.eup %2253 }
 0x107   : > { %v2256_v60 = vpop.eup %2255 }
 0x108   : > { %v2258_v55 = vpop.eup %2257  ;;  %v1951_v61 = vpack.c.bf16 %v2256_v60, %v2254_v59  ;;  %v740_v59 = vld [vmem:[%s3238_s4 + $0x190] sm:$0xff] }
 0x109   : > { %v2260_v62 = vpop.eup %2259  ;;  %v744_v60 = vld [vmem:[%s3238_s4 + $0x1b0] sm:$0xff] }
 0x10a   : > { %v2262_v63 = vpop.eup %2261  ;;  %1952 = vmatprep.subr.bf16.mxu0 %v1951_v61  ;;  %v1955_v0 = vpack.c.bf16 %v2260_v62, %v2258_v55  ;;  %v2025_v55 = vpack.c.bf16 %v744_v60, %v740_v59  ;;  %v751_v62 = vld [vmem:[%s3238_s4 + $0x1e8] sm:$0xff]  ;;  %v962_v59 = vld [vmem:[%s3239_s5 + $0x1b0] sm:$0xff]  ;;  %v963_v60 = vld [vmem:[%s3239_s5 + $0x1b8] sm:$0xff] }
 0x10b   : > { %v2264_v3 = vpop.eup %2263  ;;  %1954 = vmatpush3.bf16.msra.mxu0 %v1951_v61  ;;  %v747_v61 = vld [vmem:[%s3238_s4 + $0x1c8] sm:$0xff] }
 0x10c   : > { %v2266_v4 = vpop.eup %2265  ;;  %1956 = vmatprep.subr.bf16.mxu0 %v1955_v0  ;;  %v1959_v5 = vpack.c.bf16 %v2264_v3, %v2262_v63  ;;  %v749_v63 = vld [vmem:[%s3238_s4 + $0x1d8] sm:$0xff] }
 0x10d   : > { %v1963_v6 = vpack.c.bf16 %v2266_v4, %v2252_v58  ;;  %v2023_v58 = vpack.c.bf16 %v745_v26, %v741_v12  ;;  %v753_v3 = vld [vmem:[%s3238_s4 + $0x1f8] sm:$0xff]  ;;  %v746_v4 = vld [vmem:[%s3238_s4 + $0x1c0] sm:$0xff]  ;;  %v945_v26 = vld [vmem:[%s3239_s5 + $0x128] sm:$0xff] }
 0x10e   : > { %v944_v12 = vld [vmem:[%s3239_s5 + $0x120] sm:$0xff] }
 0x10f   : > { %1958 = vmatpush3.bf16.msra.mxu0 %v1955_v0  ;;  %v1995_v0 = vpack.c.bf16 %v751_v62, %v747_v61  ;;  %v2874_v61 = vpack.c.bf16 %v945_v26, %v944_v12  ;;  %v914_v62 = vld [vmem:[%s3239_s5 + $0x30] sm:$0xff]  ;;  %v971_v12 = vld [vmem:[%s3239_s5 + $0x1f8] sm:$0xff] }
 0x110   : > { %1960 = vmatprep.subr.bf16.mxu0 %v1959_v5 }
 0x111   : > { %1996 = vmatprep.subr.bf16.mxu1 %v1995_v0 }
 0x113   : > { %1962 = vmatpush3.bf16.msra.mxu0 %v1959_v5  ;;  %v750_v5 = vld [vmem:[%s3238_s4 + $0x1e0] sm:$0xff] }
 0x114   : > { %1964 = vmatprep.subr.bf16.mxu0 %v1963_v6  ;;  %v1997_v39 = vpack.c.bf16 %v750_v5, %v746_v4  ;;  %v946_v4 = vld [vmem:[%s3239_s5 + $0x130] sm:$0xff]  ;;  %v947_v5 = vld [vmem:[%s3239_s5 + $0x138] sm:$0xff] }
 0x116   : > { %1998 = vmatpush1.bf16.msra.mxu1 %v1997_v39  ;;  %v933_v39 = vld [vmem:[%s3239_s5 + $0xc8] sm:$0xff] }
 0x117   : > { %1966 = vmatpush3.bf16.msra.mxu0 %v1963_v6  ;;  %v2027_v6 = vpack.c.bf16 %v753_v3, %v749_v63  ;;  %v915_v63 = vld [vmem:[%s3239_s5 + $0x38] sm:$0xff]  ;;  %v2886_v3 = vpack.c.bf16 %v963_v60, %v962_v59 }
 0x118   : > { %2000 = vmatprep.subr.bf16.mxu0 %v1999_v9  ;;  %v752_v9 = vld [vmem:[%s3238_s4 + $0x1f0] sm:$0xff] }
 0x137   : > { %v355_v10 = vpop.xlane.xlu0 %354 }
 0x138   : > { %v367_v11 = vadd.f32 1.0, %v355_v10  ;;  %v2029_v10 = vpack.c.bf16 %v752_v9, %v748_v7  ;;  %v964_v7 = vld [vmem:[%s3239_s5 + $0x1c0] sm:$0xff]  ;;  %v965_v9 = vld [vmem:[%s3239_s5 + $0x1c8] sm:$0xff] }
 0x13a   : > { %2267 = vrcp.f32 %v367_v11  ;;  %v924_v11 = vld [vmem:[%s3239_s5 + $0x80] sm:$0xff] }
 0x13c   : > { %v352_v13 = vpop.xlane.xlu1 %351 }
 0x13d   : > { %v366_v35 = vadd.f32 1.0, %v352_v13  ;;  %v925_v13 = vld [vmem:[%s3239_s5 + $0x88] sm:$0xff] }
 0x13e   : > { %v2761_v14 = vpack.c.bf16 %v925_v13, %v924_v11  ;;  %v2910_v11 = vpack.c.bf16 %v947_v5, %v946_v4  ;;  %v916_v13 = vld [vmem:[%s3239_s5 + $0x40] sm:$0xff]  ;;  %v955_v4 = vld [vmem:[%s3239_s5 + $0x178] sm:$0xff] }
 0x13f   : > { %2269 = vrcp.f32 %v366_v35  ;;  %v956_v35 = vld [vmem:[%s3239_s5 + $0x180] sm:$0xff] }
 0x140   : > { %2032 = vmatprep.subr.bf16.mxu1 %v2761_v14 }
 0x144   : > { %v2268_v24 = vpop.eup %2267 }
 0x145   : > { %v371_v23 = vmul.f32 %v2268_v24, %v2497_v33  ;;  %v2005_v33 = vpack.c.bf16 %v704_v25, %v700_v22  ;;  %v2766_v24 = vpack.c.bf16 %v957_v15, %v956_v35  ;;  %v909_v22 = vld [vmem:[%s3239_s5 + $0x8] sm:$0xff]  ;;  %v927_v25 = vld [vmem:[%s3239_s5 + $0x98] sm:$0xff] }
 0x146   : > { %v2810_v38 = vpack.c.bf16 %v927_v25, %v926_v1  ;;  %v917_v35 = vld [vmem:[%s3239_s5 + $0x48] sm:$0xff]  ;;  %v919_v1 = vld [vmem:[%s3239_s5 + $0x58] sm:$0xff]  ;;  %v950_v25 = vld [vmem:[%s3239_s5 + $0x150] sm:$0xff] }
 0x149   : > { %v2270_v18 = vpop.eup %2269 }
 0x14a   : > { %v369_v19 = vmul.f32 %v2270_v18, %v2504_v43  ;;  %v713_v43 = vld [vmem:[%s3238_s4 + $0xb8] sm:$0xff]  ;;  %v602_v18 = vmul.f32 1.5625, %v600_v47  ;;  %v2922_v47 = vpack.c.bf16 %v965_v9, %v964_v7 }
 0x14b   : > { %v2007_v28 = vpack.c.bf16 %v713_v43, %v709_v27  ;;  %v958_v27 = vld [vmem:[%s3239_s5 + $0x190] sm:$0xff]  ;;  %v959_v43 = vld [vmem:[%s3239_s5 + $0x198] sm:$0xff] }
 0x14c   : > { %1948 = vmatprep.mubr.msk.f32.mxu0 %vm349_vm1, %v369_v19  ;;  %v601_v19 = vmul.f32 1.5625, %v599_v17  ;;  %v2812_v41 = vpack.c.bf16 %v959_v43, %v958_v27  ;;  %v948_v17 = vld [vmem:[%s3239_s5 + $0x140] sm:$0xff]  ;;  %v951_v27 = vld [vmem:[%s3239_s5 + $0x158] sm:$0xff] }
 0x14d   : > { %1949 = vmatmul.mubr.msk.f32.vlgmr.msra.gmra.mrb[0].mxu0 %vm349_vm1, %v371_v23  ;;  %v936_v43 = vld [vmem:[%s3239_s5 + $0xe0] sm:$0xff] }
 0x14e   : > { %2002 = vmatpush1.bf16.msra.mxu0 %v2001_v20  ;;  %895 = vmatprep.mubr.f32.mxu0 %v2344_v8  ;;  %v605_v20 = vmul.f32 1.442695, %v602_v18  ;;  %v603_v23 = vmul.f32 1.442695, %v601_v19  ;;  %v949_v18 = vld [vmem:[%s3239_s5 + $0x148] sm:$0xff]  ;;  %v934_v19 = vld [vmem:[%s3239_s5 + $0xd0] sm:$0xff] }
 0x14f   : > { %2004 = vmatprep.subr.bf16.mxu0 %v2003_v21  ;;  %v908_v21 = vld [vmem:[%s3239_s5] sm:$0xff]  ;;  %v2946_v2 = vpack.c.bf16 %v949_v18, %v948_v17 }
 0x150   : > { %2271 = vpow2.f32 %v605_v20  ;;  %v2800_v31 = vpack.c.bf16 %v909_v22, %v908_v21  ;;  %v935_v20 = vld [vmem:[%s3239_s5 + $0xd8] sm:$0xff]  ;;  %v2944_v22 = vpack.c.bf16 %v917_v35, %v916_v13  ;;  %v980_v18 = vld [vmem:[%s3240_s6 + $0x40] sm:$0xff] }
 0x151   : > { %2273 = vpow2.f32 %v603_v23  ;;  %v966_v23 = vld [vmem:[%s3239_s5 + $0x1d0] sm:$0xff]  ;;  %v967_v21 = vld [vmem:[%s3239_s5 + $0x1d8] sm:$0xff] }
 0x152   : > { %2006 = vmatpush1.bf16.msra.mxu0 %v2005_v33 }
 0x153   : > { %2008 = vmatprep.subr.bf16.mxu0 %v2007_v28 }
 0x156   : > { %2010 = vmatpush1.bf16.msra.mxu0 %v2009_v36  ;;  %v910_v36 = vld [vmem:[%s3239_s5 + $0x10] sm:$0xff] }
 0x157   : > { %2012 = vmatprep.subr.bf16.mxu0 %v2011_v37  ;;  %v911_v37 = vld [vmem:[%s3239_s5 + $0x18] sm:$0xff] }
 0x158   : > { %v2836_v32 = vpack.c.bf16 %v911_v37, %v910_v36  ;;  %v2982_v36 = vpack.c.bf16 %v951_v27, %v950_v25  ;;  %v920_v37 = vld [vmem:[%s3239_s5 + $0x60] sm:$0xff] }
 0x159   : > { %v3016_v26 = vpack.c.bf16 %v921_v42, %v920_v37 }
 0x15a   : > { %2014 = vmatpush1.bf16.msra.mxu0 %v2013_v45  ;;  %v2272_v53 = vpop.eup %2271  ;;  %v928_v45 = vld [vmem:[%s3239_s5 + $0xa0] sm:$0xff] }
 0x15b   : > { %2016 = vmatprep.subr.bf16.mxu0 %v2015_v46  ;;  %v2274_v33 = vpop.eup %2273  ;;  %v929_v46 = vld [vmem:[%s3239_s5 + $0xa8] sm:$0xff] }
 0x15c   : > { %v2848_v40 = vpack.c.bf16 %v929_v46, %v928_v45  ;;  %v952_v46 = vld [vmem:[%s3239_s5 + $0x160] sm:$0xff] }
 0x15e   : > { %2018 = vmatpush1.bf16.msra.mxu0 %v2017_v56  ;;  %v912_v56 = vld [vmem:[%s3239_s5 + $0x20] sm:$0xff] }
 0x15f   : > { %2020 = vmatprep.subr.bf16.mxu0 %v2019_v52  ;;  %v913_v52 = vld [vmem:[%s3239_s5 + $0x28] sm:$0xff] }
 0x162   : > { %2022 = vmatpush1.bf16.msra.mxu0 %v2021_v57  ;;  %v930_v57 = vld [vmem:[%s3239_s5 + $0xb0] sm:$0xff] }
 0x163   : > { %2024 = vmatprep.subr.bf16.mxu0 %v2023_v58  ;;  %v931_v58 = vld [vmem:[%s3239_s5 + $0xb8] sm:$0xff] }
 0x164   : > { %v2884_v0 = vpack.c.bf16 %v931_v58, %v930_v57  ;;  %v3018_v57 = vpack.c.bf16 %v953_v48, %v952_v46  ;;  %v922_v58 = vld [vmem:[%s3239_s5 + $0x70] sm:$0xff] }
 0x166   : > { %2026 = vmatpush1.bf16.msra.mxu0 %v2025_v55  ;;  %v2872_v55 = vpack.c.bf16 %v913_v52, %v912_v56  ;;  %v939_v56 = vld [vmem:[%s3239_s5 + $0xf8] sm:$0xff]  ;;  %v970_v52 = vld [vmem:[%s3239_s5 + $0x1f0] sm:$0xff] }
 0x167   : > { %2028 = vmatprep.subr.bf16.mxu0 %v2027_v6  ;;  %v932_v6 = vld [vmem:[%s3239_s5 + $0xc0] sm:$0xff]  ;;  %v2059_v59 = vpack.c.bf16 %v939_v56, %v938_v49  ;;  %v2091_v60 = vpack.c.bf16 %v971_v12, %v970_v52 }
 0x168   : > { %v2920_v15 = vpack.c.bf16 %v933_v39, %v932_v6 }
 0x16a   : > { %2030 = vmatpush1.bf16.msra.mxu0 %v2029_v10  ;;  %v2908_v10 = vpack.c.bf16 %v915_v63, %v914_v62  ;;  %v923_v62 = vld [vmem:[%s3239_s5 + $0x78] sm:$0xff]  ;;  %v954_v63 = vld [vmem:[%s3239_s5 + $0x170] sm:$0xff] }
 0x16b   : > { %2064 = vmatprep.subr.bf16.mxu0 %v2766_v24  ;;  %v2061_v5 = vpack.c.bf16 %v923_v62, %v922_v58  ;;  %v2093_v6 = vpack.c.bf16 %v955_v4, %v954_v63  ;;  %v983_v58 = vld [vmem:[%s3240_s6 + $0x58] sm:$0xff] }
 0x220   : > { %v1950_v54 = vpop.f32.mrb[0].mxu0 }
 0x221   : > { %v689_v28 = vmul.f32 %v2272_v53, %v1950_v54  ;;  %v679_v29 = vpop.f32.mrb[1].mxu0  ;;  %v2956_v53 = vpack.c.bf16 %v935_v20, %v934_v19  ;;  %v2958_v54 = vpack.c.bf16 %v967_v21, %v966_v23  ;;  %v984_v20 = vld [vmem:[%s3240_s6 + $0x60] sm:$0xff]  ;;  %v975_v21 = vld [vmem:[%s3240_s6 + $0x18] sm:$0xff] }
 0x222   : > { %v688_v30 = vmul.f32 %v2274_v33, %v679_v29  ;;  %v937_v33 = vld [vmem:[%s3239_s5 + $0xe8] sm:$0xff]  ;;  %v2165_v23 = vpack.c.bf16 %v984_v20, %v980_v18 }
 0x223   : > { %v969_v29 = vld [vmem:[%s3239_s5 + $0x1e8] sm:$0xff]  ;;  %v2992_v44 = vpack.c.bf16 %v937_v33, %v936_v43 }
 0x224   : > { %819 = vmatmul.mubr.f32.vlgmr.msra.gmra.mrb[0].mxu1 %v688_v30  ;;  %896 = vmatmul.mubr.f32.vlgmr.msra.gmra.mrb[2].mxu0 %v688_v30  ;;  %v2980_v30 = vpack.c.bf16 %v919_v1, %v918_v16 }
 0x225   : > { %824 = vmatprep.mubr.f32.mxu1 %v2344_v8  ;;  %901 = vmatprep.mubr.f32.mxu0 %v2344_v8 }
 0x226   : > { %2034 = vmatpush3.bf16.msra.mxu1 %v2800_v31  ;;  %2066 = vmatpush3.bf16.msra.mxu0 %v2802_v34 }
 0x227   : > { %2036 = vmatprep.subr.bf16.mxu1 %v2810_v38  ;;  %2068 = vmatprep.subr.bf16.mxu0 %v2812_v41 }
 0x228   : > { %825 = vmatmul.mubr.f32.gmra.mrb[2].mxu1 %v689_v28  ;;  %902 = vmatmul.mubr.f32.gmra.mrb[4].mxu0 %v689_v28  ;;  %v968_v28 = vld [vmem:[%s3239_s5 + $0x1e0] sm:$0xff] }
 0x229   : > { %v2994_v45 = vpack.c.bf16 %v969_v29, %v968_v28 }
 0x22a   : > { %2038 = vmatpush3.bf16.msra.mxu1 %v2836_v32  ;;  %2070 = vmatpush3.bf16.msra.mxu0 %v2838_v50 }
 0x22b   : > { %2040 = vmatprep.subr.bf16.mxu1 %v2848_v40  ;;  %2072 = vmatprep.subr.bf16.mxu0 %v2850_v51 }
 0x22e   : > { %2042 = vmatpush3.bf16.msra.mxu1 %v2872_v55  ;;  %2074 = vmatpush3.bf16.msra.mxu0 %v2874_v61 }
 0x22f   : > { %2044 = vmatprep.subr.bf16.mxu1 %v2884_v0  ;;  %2076 = vmatprep.subr.bf16.mxu0 %v2886_v3 }
 0x232   : > { %2046 = vmatpush3.bf16.msra.mxu1 %v2908_v10  ;;  %2078 = vmatpush3.bf16.msra.mxu0 %v2910_v11 }
 0x233   : > { %2048 = vmatprep.subr.bf16.mxu1 %v2920_v15  ;;  %2080 = vmatprep.subr.bf16.mxu0 %v2922_v47 }
 0x236   : > { %2050 = vmatpush3.bf16.msra.mxu1 %v2944_v22  ;;  %2082 = vmatpush3.bf16.msra.mxu0 %v2946_v2 }
 0x237   : > { %2052 = vmatprep.subr.bf16.mxu1 %v2956_v53  ;;  %2084 = vmatprep.subr.bf16.mxu0 %v2958_v54 }
 0x23a   : > { %2054 = vmatpush3.bf16.msra.mxu1 %v2980_v30  ;;  %2086 = vmatpush3.bf16.msra.mxu0 %v2982_v36 }
 0x23b   : > { %2056 = vmatprep.subr.bf16.mxu1 %v2992_v44  ;;  %2088 = vmatprep.subr.bf16.mxu0 %v2994_v45 }
 0x23e   : > { %2058 = vmatpush3.bf16.msra.mxu1 %v3016_v26  ;;  %2090 = vmatpush3.bf16.msra.mxu0 %v3018_v57 }
 0x23f   : > { %2060 = vmatprep.subr.bf16.mxu1 %v2059_v59  ;;  %2092 = vmatprep.subr.bf16.mxu0 %v2091_v60 }
 0x242   : > { %2062 = vmatpush3.bf16.msra.mxu1 %v2061_v5  ;;  %2094 = vmatpush3.bf16.msra.mxu0 %v2093_v6 }
 0x243   : > { %2096 = vmatprep.subr.bf16.mxu1 %v2761_v14  ;;  %2128 = vmatprep.subr.bf16.mxu0 %v2766_v24 }
 0x2f7   : > { %v3038_v39 = vpop.f32.mrb[0].mxu1  ;;  %v3040_v7 = vpop.f32.mrb[2].mxu0 }
 0x2f8   : > { %v3042_v9 = vpop.f32.mrb[1].mxu1  ;;  %v3044_v13 = vpop.f32.mrb[3].mxu0 }
 0x2f9   : > { %1052 = vmatprep.mubr.f32.mxu1 %v3042_v9  ;;  %1127 = vmatprep.mubr.f32.mxu0 %v3044_v13 }
 0x2fa   : > { %1053 = vmatmul.mubr.f32.vlgmr.msra.gmra.mrb[4].mxu1 %v3038_v39  ;;  %1128 = vmatmul.mubr.f32.vlgmr.msra.gmra.mrb[6].mxu0 %v3040_v7 }
 0x2fb   : > { %2098 = vmatpush3.bf16.msra.mxu1 %v2800_v31  ;;  %2130 = vmatpush3.bf16.msra.mxu0 %v2802_v34  ;;  %v3052_v14 = vpop.f32.mrb[2].mxu1  ;;  %v3054_v24 = vpop.f32.mrb[4].mxu0  ;;  %v1139_v31 = vmul.f32 %v3042_v9, %v3042_v9  ;;  %v1141_v34 = vmul.f32 %v3044_v13, %v3044_v13 }
 0x2fc   : > { %v3056_v35 = vpop.f32.mrb[3].mxu1  ;;  %v3058_v17 = vpop.f32.mrb[5].mxu0  ;;  %2100 = vmatprep.subr.bf16.mxu1 %v2810_v38  ;;  %2132 = vmatprep.subr.bf16.mxu0 %v2812_v41  ;;  %v1138_v38 = vmul.f32 %v3038_v39, %v3038_v39  ;;  %v1140_v41 = vmul.f32 %v3040_v7, %v3040_v7 }
 0x2fd   : > { %1057 = vmatprep.mubr.f32.mxu1 %v3056_v35  ;;  %1132 = vmatprep.mubr.f32.mxu0 %v3058_v17 }
 0x2fe   : > { %1058 = vmatmul.mubr.f32.gmra.mrb[6].mxu1 %v3052_v14  ;;  %1133 = vmatmul.mubr.f32.gmra.mrb[8].mxu0 %v3054_v24 }
 0x2ff   : > { %2102 = vmatpush3.bf16.msra.mxu1 %v2836_v32  ;;  %2134 = vmatpush3.bf16.msra.mxu0 %v2838_v50  ;;  %v1143_v32 = vmul.f32 %v3056_v35, %v3056_v35  ;;  %v1145_v50 = vmul.f32 %v3058_v17, %v3058_v17 }
 0x300   : > { %1210 = vmatprep.mubr.f32.mxu1 %v1139_v31  ;;  %1285 = vmatprep.mubr.f32.mxu0 %v1141_v34 }
 0x301   : > { %2104 = vmatprep.subr.bf16.mxu1 %v2848_v40  ;;  %2136 = vmatprep.subr.bf16.mxu0 %v2850_v51  ;;  %v1142_v40 = vmul.f32 %v3052_v14, %v3052_v14  ;;  %v1144_v51 = vmul.f32 %v3054_v24, %v3054_v24 }
 0x303   : > { %2106 = vmatpush3.bf16.msra.mxu1 %v2872_v55  ;;  %2138 = vmatpush3.bf16.msra.mxu0 %v2874_v61  ;;  %v973_v55 = vld [vmem:[%s3240_s6 + $0x8] sm:$0xff] }
 0x304   : > { %2108 = vmatprep.subr.bf16.mxu1 %v2884_v0  ;;  %2140 = vmatprep.subr.bf16.mxu0 %v2886_v3  ;;  %v977_v61 = vld [vmem:[%s3240_s6 + $0x28] sm:$0xff]  ;;  %v972_v3 = vld [vmem:[%s3240_s6] sm:$0xff] }
 0x305   : > { %v2159_v0 = vpack.c.bf16 %v977_v61, %v973_v55 }
 0x307   : > { %2110 = vmatpush3.bf16.msra.mxu1 %v2908_v10  ;;  %2142 = vmatpush3.bf16.msra.mxu0 %v2910_v11  ;;  %v976_v10 = vld [vmem:[%s3240_s6 + $0x20] sm:$0xff] }
 0x308   : > { %2112 = vmatprep.subr.bf16.mxu1 %v2920_v15  ;;  %2144 = vmatprep.subr.bf16.mxu0 %v2922_v47  ;;  %v2161_v11 = vpack.c.bf16 %v976_v10, %v972_v3  ;;  %v981_v15 = vld [vmem:[%s3240_s6 + $0x48] sm:$0xff] }
 0x309   : > { %v985_v47 = vld [vmem:[%s3240_s6 + $0x68] sm:$0xff] }
 0x30a   : > { %v2163_v19 = vpack.c.bf16 %v985_v47, %v981_v15 }
 0x30b   : > { %2114 = vmatpush3.bf16.msra.mxu1 %v2944_v22  ;;  %2146 = vmatpush3.bf16.msra.mxu0 %v2946_v2  ;;  %v979_v22 = vld [vmem:[%s3240_s6 + $0x38] sm:$0xff] }
 0x30c   : > { %2116 = vmatprep.subr.bf16.mxu1 %v2956_v53  ;;  %2148 = vmatprep.subr.bf16.mxu0 %v2958_v54  ;;  %v2167_v2 = vpack.c.bf16 %v979_v22, %v975_v21 }
 0x30f   : > { %2118 = vmatpush3.bf16.msra.mxu1 %v2980_v30  ;;  %2150 = vmatpush3.bf16.msra.mxu0 %v2982_v36 }
 0x310   : > { %2120 = vmatprep.subr.bf16.mxu1 %v2992_v44  ;;  %2152 = vmatprep.subr.bf16.mxu0 %v2994_v45 }
 0x313   : > { %2122 = vmatpush3.bf16.msra.mxu1 %v3016_v26  ;;  %2154 = vmatpush3.bf16.msra.mxu0 %v3018_v57  ;;  %v974_v26 = vld [vmem:[%s3240_s6 + $0x10] sm:$0xff] }
 0x314   : > { %2124 = vmatprep.subr.bf16.mxu1 %v2059_v59  ;;  %2156 = vmatprep.subr.bf16.mxu0 %v2091_v60  ;;  %v978_v57 = vld [vmem:[%s3240_s6 + $0x30] sm:$0xff]  ;;  %v987_v59 = vld [vmem:[%s3240_s6 + $0x78] sm:$0xff] }
 0x315   : > { %v2169_v62 = vpack.c.bf16 %v978_v57, %v974_v26  ;;  %v2171_v4 = vpack.c.bf16 %v987_v59, %v983_v58 }
 0x317   : > { %2126 = vmatpush3.bf16.msra.mxu1 %v2061_v5  ;;  %2158 = vmatpush3.bf16.msra.mxu0 %v2093_v6  ;;  %v982_v5 = vld [vmem:[%s3240_s6 + $0x50] sm:$0xff] }
 0x318   : > { %2160 = vmatprep.subr.bf16.mxu1 %v2159_v0  ;;  %2176 = vmatprep.subr.bf16.mxu0 %v2159_v0  ;;  %v986_v6 = vld [vmem:[%s3240_s6 + $0x70] sm:$0xff] }
 0x319   : > { %v2173_v31 = vpack.c.bf16 %v986_v6, %v982_v5 }
 0x31a   : > { %1211 = vmatmul.mubr.f32.vlgmr.msra.gmra.mrb[8].mxu1 %v1138_v38  ;;  %1286 = vmatmul.mubr.f32.vlgmr.msra.gmra.mrb[10].mxu0 %v1140_v41 }
 0x31b   : > { %1215 = vmatprep.mubr.f32.mxu1 %v1143_v32  ;;  %1290 = vmatprep.mubr.f32.mxu0 %v1145_v50 }
 0x31c   : > { %2162 = vmatpush1.bf16.msra.mxu1 %v2161_v11  ;;  %2178 = vmatpush1.bf16.msra.mxu0 %v2161_v11 }
 0x31d   : > { %2164 = vmatprep.subr.bf16.mxu1 %v2163_v19  ;;  %2180 = vmatprep.subr.bf16.mxu0 %v2163_v19 }
 0x31e   : > { %1216 = vmatmul.mubr.f32.gmra.mrb[10].mxu1 %v1142_v40  ;;  %1291 = vmatmul.mubr.f32.gmra.mrb[12].mxu0 %v1144_v51 }
 0x31f   : > { %1389 = vmatprep.mubr.f32.mxu1 %v2344_v8  ;;  %1546 = vmatprep.mubr.f32.mxu0 %v2344_v8 }
 0x320   : > { %2166 = vmatpush1.bf16.msra.mxu1 %v2165_v23  ;;  %2182 = vmatpush1.bf16.msra.mxu0 %v2165_v23 }
 0x321   : > { %2168 = vmatprep.subr.bf16.mxu1 %v2167_v2 }
 0x3cd   : > { %v1812_v16 = vpop.f32.mrb[4].mxu1  ;;  %v1850_v1 = vpop.f32.mrb[6].mxu0 }
 0x3ce   : > { %v1813_v53 = vpop.f32.mrb[5].mxu1  ;;  %v1851_v54 = vpop.f32.mrb[7].mxu0 }
 0x3cf   : > { %v1814_v25 = vadd.f32 %v1813_v53, %v1812_v16  ;;  %v1852_v27 = vadd.f32 %v1851_v54, %v1850_v1 }
 0x3d1   : > { %v1130_v43 = vadd.f32 %v1852_v27, %v1814_v25  ;;  %v1815_v33 = vpop.f32.mrb[6].mxu1  ;;  %v1853_v28 = vpop.f32.mrb[8].mxu0 }
 0x3d2   : > { %v1816_v29 = vpop.f32.mrb[7].mxu1  ;;  %v1854_v30 = vpop.f32.mrb[9].mxu0 }
 0x3d3   : > { %v1817_v36 = vadd.f32 %v1816_v29, %v1815_v33  ;;  %v1855_v37 = vadd.f32 %v1854_v30, %v1853_v28  ;;  %v1297_v44 = vsel %vm1296_vm4, %v1130_v43, 0.0 }
 0x3d5   : > { %v1135_v42 = vadd.f32 %v1855_v37, %v1817_v36 }
 0x3d7   : > { %v1298_v45 = vsel %vm1296_vm4, %v1135_v42, 0.0 }
 0x3d8   : > { %v1299_v46 = vadd.f32 %v1298_v45, %v1297_v44 }
 0x3da   : > { %v1300_v48 = vrot.slane %v1299_v46, 4 }
 0x3dc   : > { %v1301_v49 = vadd.f32 %v1300_v48, %v1299_v46 }
 0x3de   : > { %v1302_v56 = vrot.slane %v1301_v49, 2 }
 0x3e0   : > { %v1303_v52 = vadd.f32 %v1302_v56, %v1301_v49 }
 0x3e2   : > { %v1304_v12 = vrot.slane %v1303_v52, 1 }
 0x3e4   : > { %v1305_v60 = vadd.f32 %v1304_v12, %v1303_v52 }
 0x3e6   : > { %v1306_v63 = vmul.f32 0.00390625, %v1305_v60 }
 0x3e8   : > { %1755 = vmatmul.mubr.msk.f32.vlgmr.msra.gmra.mrb[12].mxu1 %vm1296_vm4, %v1306_v63  ;;  %v1317_v53 = vmul.f32 %v1306_v63, %v1306_v63 }
 0x3e9   : > { %2170 = vmatpush1.bf16.msra.mxu1 %v2169_v62  ;;  %1395 = vmatprep.mubr.f32.mxu1 %v2344_v8 }
 0x3ea   : > { %2172 = vmatprep.subr.bf16.mxu1 %v2171_v4 }
 0x3ec   : > { %1756 = vmatmul.mubr.msk.f32.gmra.mrb[14].mxu1 %vm1296_vm4, %v1306_v63 }
 0x3ed   : > { %v1888_v34 = vpop.f32.mrb[8].mxu1  ;;  %v1926_v38 = vpop.f32.mrb[10].mxu0  ;;  %2174 = vmatpush1.bf16.msra.mxu1 %v2173_v31  ;;  %1466 = vmatprep.mubr.f32.mxu1 %v2344_v8 }
 0x3ee   : > { %v1889_v41 = vpop.f32.mrb[9].mxu1  ;;  %v1927_v32 = vpop.f32.mrb[11].mxu0  ;;  %2184 = vmatprep.subr.bf16.mxu1 %v2167_v2 }
 0x3ef   : > { %v1890_v50 = vadd.f32 %v1889_v41, %v1888_v34  ;;  %v1928_v40 = vadd.f32 %v1927_v32, %v1926_v38 }
 0x3f0   : > { %1757 = vmatmul.mubr.msk.f32.vlgmr.msra.gmra.mrb[16].mxu1 %vm1296_vm4, %v1306_v63 }
 0x3f1   : > { %v1288_v51 = vadd.f32 %v1928_v40, %v1890_v50  ;;  %v1891_v55 = vpop.f32.mrb[10].mxu1  ;;  %v1929_v61 = vpop.f32.mrb[12].mxu0  ;;  %1472 = vmatprep.mubr.f32.mxu1 %v2344_v8  ;;  %2186 = vmatpush1.bf16.msra.mxu1 %v2169_v62 }
 0x3f2   : > { %v1892_v0 = vpop.f32.mrb[11].mxu1  ;;  %v1930_v3 = vpop.f32.mrb[13].mxu0  ;;  %2188 = vmatprep.subr.bf16.mxu1 %v2171_v4 }
 0x3f3   : > { %v1893_v10 = vadd.f32 %v1892_v0, %v1891_v55  ;;  %v1931_v11 = vadd.f32 %v1930_v3, %v1929_v61  ;;  %v1307_v47 = vsel %vm1296_vm4, %v1288_v51, 0.0 }
 0x3f4   : > { %1758 = vmatmul.mubr.msk.f32.gmra.mrb[18].mxu1 %vm1296_vm4, %v1306_v63 }
 0x3f5   : > { %v1293_v15 = vadd.f32 %v1931_v11, %v1893_v10  ;;  %2190 = vmatpush1.bf16.msra.mxu1 %v2173_v31  ;;  %1623 = vmatprep.mubr.f32.mxu1 %v2344_v8 }
 0x3f7   : > { %v1308_v18 = vsel %vm1296_vm4, %v1293_v15, 0.0 }
 0x3f8   : > { %v1309_v19 = vadd.f32 %v1308_v18, %v1307_v47 }
 0x3fa   : > { %v1310_v20 = vrot.slane %v1309_v19, 4 }
 0x3fc   : > { %v1311_v23 = vadd.f32 %v1310_v20, %v1309_v19 }
 0x3fe   : > { %v1312_v21 = vrot.slane %v1311_v23, 2 }
 0x400   : > { %v1313_v22 = vadd.f32 %v1312_v21, %v1311_v23 }
 0x402   : > { %v1314_v2 = vrot.slane %v1313_v22, 1 }
 0x404   : > { %v1315_v16 = vadd.f32 %v1314_v2, %v1313_v22 }
 0x406   : > { %v1316_v1 = vmul.f32 0.00390625, %v1315_v16 }
 0x408   : > { %v1318_v54 = vsub.f32 %v1316_v1, %v1317_v53 }
 0x40a   : > { %v1319_v25 = vmax.f32 %v1318_v54, 0.0 }
 0x40c   : > { %v1320_v27 = vadd.f32 1e-05, %v1319_v25 }
 0x40e   : > { %2275 = vrsqrt.f32 %v1320_v27 }
 0x418   : > { %v2276_v43 = vpop.eup %2275 }
 0x419   : > { %1759 = vmatmul.mubr.msk.f32.vlgmr.msra.gmra.mrb[14].mxu0 %vm1296_vm4, %v2276_v43  ;;  %1761 = vmatmul.mubr.msk.f32.vlgmr.msra.gmra.mrb[20].mxu1 %vm1296_vm4, %v2276_v43 }
 0x41a   : > { %1552 = vmatprep.mubr.f32.mxu0 %v2344_v8  ;;  %1629 = vmatprep.mubr.f32.mxu1 %v2344_v8 }
 0x41d   : > { %1760 = vmatmul.mubr.msk.f32.gmra.mrb[16].mxu0 %vm1296_vm4, %v2276_v43  ;;  %1762 = vmatmul.mubr.msk.f32.gmra.mrb[22].mxu1 %vm1296_vm4, %v2276_v43 }
 0x4bb   : > { %v1391_v33 = vpop.f32.mrb[12].mxu1 }
 0x4bc   : > { %v1636_v28 = vsub.f32 %v3038_v39, %v1391_v33  ;;  %v1393_v29 = vpop.f32.mrb[13].mxu1 }
 0x4bd   : > { %v1637_v30 = vsub.f32 %v3042_v9, %v1393_v29 }
 0x4bf   : > { %v1397_v36 = vpop.f32.mrb[14].mxu1 }
 0x4c0   : > { %v1640_v37 = vsub.f32 %v3052_v14, %v1397_v36  ;;  %v1399_v42 = vpop.f32.mrb[15].mxu1 }
 0x4c1   : > { %v1641_v44 = vsub.f32 %v3056_v35, %v1399_v42 }
 0x4c3   : > { %v1468_v45 = vpop.f32.mrb[16].mxu1 }
 0x4c4   : > { %v1638_v8 = vsub.f32 %v3040_v7, %v1468_v45  ;;  %v1470_v46 = vpop.f32.mrb[17].mxu1 }
 0x4c5   : > { %v1639_v48 = vsub.f32 %v3044_v13, %v1470_v46 }
 0x4c7   : > { %v1474_v49 = vpop.f32.mrb[18].mxu1 }
 0x4c8   : > { %v1642_v56 = vsub.f32 %v3054_v24, %v1474_v49  ;;  %v1476_v39 = vpop.f32.mrb[19].mxu1 }
 0x4c9   : > { %v1643_v52 = vsub.f32 %v3058_v17, %v1476_v39 }
 0x4ec   : > { %v1548_v9 = vpop.f32.mrb[14].mxu0  ;;  %v1625_v14 = vpop.f32.mrb[20].mxu1 }
 0x4ed   : > { %v1644_v12 = vmul.f32 %v1636_v28, %v1548_v9  ;;  %v1646_v35 = vmul.f32 %v1638_v8, %v1625_v14  ;;  %v1550_v26 = vpop.f32.mrb[15].mxu0  ;;  %v1627_v57 = vpop.f32.mrb[21].mxu1 }
 0x4ee   : > { %v1645_v7 = vmul.f32 %v1637_v30, %v1550_v26  ;;  %v1647_v58 = vmul.f32 %v1639_v48, %v1627_v57 }
 0x4ef   : > { %v1652_v59 = vmax.f32 %v1644_v12, 0.0  ;;  %v1654_v13 = vmax.f32 %v1646_v35, 0.0 }
 0x4f0   : > { %v1653_v60 = vmax.f32 %v1645_v7, 0.0  ;;  %v1655_v62 = vmax.f32 %v1647_v58, 0.0  ;;  %v1554_v24 = vpop.f32.mrb[16].mxu0  ;;  %v1631_v63 = vpop.f32.mrb[22].mxu1 }
 0x4f1   : > { %1660 = vst [vmem:[%s271_s21] sm:$0xff] %v1652_v59  ;;  %1662 = vst [vmem:[%s271_s21 + $0x10] sm:$0xff] %v1654_v13  ;;  %v1648_v17 = vmul.f32 %v1640_v37, %v1554_v24  ;;  %v1650_v4 = vmul.f32 %v1642_v56, %v1631_v63  ;;  %v1556_v5 = vpop.f32.mrb[17].mxu0  ;;  %v1633_v6 = vpop.f32.mrb[23].mxu1 }
 0x4f2   : > { %1661 = vst [vmem:[%s271_s21 + $0x8] sm:$0xff] %v1653_v60  ;;  %1663 = vst [vmem:[%s271_s21 + $0x18] sm:$0xff] %v1655_v62  ;;  %v1649_v31 = vmul.f32 %v1641_v44, %v1556_v5  ;;  %v1651_v34 = vmul.f32 %v1643_v52, %v1633_v6 }
 0x4f3   : > { %v1656_v38 = vmax.f32 %v1648_v17, 0.0  ;;  %v1658_v41 = vmax.f32 %v1650_v4, 0.0 }
 0x4f4   : > { %v1657_v32 = vmax.f32 %v1649_v31, 0.0  ;;  %v1659_v50 = vmax.f32 %v1651_v34, 0.0 }
 0x4f5   : > { %1664 = vst [vmem:[%s271_s21 + $0x20] sm:$0xff] %v1656_v38  ;;  %1666 = vst [vmem:[%s271_s21 + $0x30] sm:$0xff] %v1658_v41 }
 0x4f6   : > { %1665 = vst [vmem:[%s271_s21 + $0x28] sm:$0xff] %v1657_v32  ;;  %1667 = vst [vmem:[%s271_s21 + $0x38] sm:$0xff] %v1659_v50 }
 0x4f7   : > { %2290 = shalt.err (!%p2287_p3)
}
 0x4f8   : > { %s2291_s16 = scalar_lea.hbm %s3187_s28, 1024  ;;  %s2295_s19 = scalar_lea.hbm %s3241_s7, 2048 }
 0x4f9   : > { %p2292_p4 = scmp.ne.s32.totalorder %s3187_s28, %s2291_s16  ;;  %p2296_p9 = scmp.lt.u32.totalorder %s3187_s28, %s3241_s7 }
 0x4fa   : > { %p2297_p10 = scmp.lt.u32.totalorder %s2295_s19, %s2291_s16  ;;  %p2299_p12 = scmp.lt.u32.totalorder %s2291_s16, %s3187_s28 }
 0x4fb   : > { %p2293_p7 = pnand %p2292_p4, %p2426_p5 }
 0x4fc   : > { %p2298_p11 = por %p2297_p10, %p2296_p9 }
 0x4fd   : > { %p2294_p8 = pneg %p2293_p7 }
 0x4fe   : > { %p2300_p13 = por %p2299_p12, %p2298_p11 }
 0x500   : > { %p2301_p0 = pnand %p2300_p13, %p2294_p8 }
 0x502   : > { %2304 = shalt.err (!%p2301_p0)
}
 0x503   : > { %s2346_s23 = smov 512   ;;  %s2347_s29 = smov 32  }
 0x504   : > { %2191 = dma.vmem_to_hbm [thread:$0]  (%p2426_p5), %s3189_s22, 1024, %s3187_s28, %s3193_s8, %s2346_s23, %s2346_s23, %s2347_s29  }
 0x505 PF: > { %p2197_p1 = scmp.ge.s32.totalorder %s2339_s27, 2  ;;  %s1697_s9 = sand.u32 1, %s2327_s24  }
 0x506   : > { %s1698_s13 = scalar_lea.sflag [#allocation3], %s1697_s9 }
 0x507   : > { %p2194_p2 = pnand %p2197_p1, %p2430_p6 }
 0x509   : > { %2322 = dma.done.wait (!%p2194_p2), %s1698_s13, 1024  }
 0x50a   : > { %2324 = vsyncadd (!%p2194_p2), %s1698_s13, 4294966272  ;;  %p17_p3 = scmp.ge.s32.totalorder %s2413_s30, 4   ;;  %s3244_s24 = smov %s2331_s25 }
 0x50b   : > { %s3245_s25 = smov %s2335_s26  ;;  %s3246_s26 = smov %s2424_s10 }
 0x50c   : > { %s3247_s27 = smov %s2413_s30  ;;  %19 = sbr.rel (!%p17_p3) target bundleno = 3 (0x3), region = 83 }
 0x513   :  { %1703 = vsyncpa [#allocation3], 1 }
 0x514   :  { %1705 = vsyncpa [#allocation3 + $0x1], 1 }

</bundles_post_ra>
